<compile_context>
chip_gen: v7x
topology: tpu7x:2x2x1
jax: 0.10.0
libtpu: 0.0.40
codegen_flags: <defaults>
</compile_context>

<pallas_src>
import functools

import jax
import jax.numpy as jnp
import numpy as np
from jax import lax
from jax.experimental import pallas as pl
from jax.experimental.pallas import tpu as pltpu


# ConvTranspose2d(k=4, s=2, p=1), decomposed per spatial dim by output parity:
#   out[2m]   = x[m] * W[1] + x[m-1] * W[3]
#   out[2m+1] = x[m] * W[2] + x[m+1] * W[0]
_T_OFF = ((0, -1), (0, 1))   # input offset per (parity, tap)
_T_KER = ((1, 3), (2, 0))    # matching ConvTranspose kernel indices


# ---------------------------------------------------------------------------
# In-kernel helpers (values are (C, H*W): C on sublanes, flat spatial on lanes)
# ---------------------------------------------------------------------------

def _lane_roll(x, k):
    """Circular left shift along lanes: out[:, s] = x[:, (s + k) % S].
    Two static lane slices + one concat (the lane-rotate / XLU path)."""
    n = x.shape[-1]
    k %= n
    if k == 0:
        return x
    return jnp.concatenate([x[:, k:], x[:, :k]], axis=1)


def _masked_shift(x, dy, dx, width, m_ref):
    """x: (C, h*w) flat row-major.  Returns y with
    y[c, r*w + q] = x[c, (r+dy)*w + (q+dx)] when in bounds, else 0.
    The wrapped-around lanes are killed by a precomputed 0/1 mask (exact)."""
    if dy == 0 and dx == 0:
        return x
    shifted = _lane_roll(x, dy * width + dx)
    return shifted * m_ref[dy + 2, dx + 2]          # (1, h*w) broadcast over C


# ---------------------------------------------------------------------------
# Fused kernel: all three layers, intermediates stay in VMEM / vregs
# ---------------------------------------------------------------------------

def _decoder_kernel(x_ref, w1_ref, b1_ref, m_ref,
                    w2_ref, b2_ref, w3_ref, b3_ref, o_ref, *, h, w):
    S = h * w

    # ---- layer 1: Conv2d 5x5, pad 2, + ReLU  (single matmul, K = 25*C0) ----
    x0 = x_ref[0]                                              # (C0, S)
    blocks = [_masked_shift(x0, ky - 2, kx - 2, w, m_ref)
              for ky in range(5) for kx in range(5)]           # 25 x (C0, S)
    patches = jnp.concatenate(blocks, axis=0)                  # (25*C0, S) sublane concat
    b1 = b1_ref[...]                                           # (C1, 1)
    x1 = jnp.dot(w1_ref[...], patches,
                 preferred_element_type=jnp.float32) + b1
    x1 = jnp.maximum(x1, 0.0)                                  # (C1, S)

    # ---- layer 2: ConvT 4x4 s2 p1 + ReLU, kept as 4 parity planes ----------
    cache1 = {}

    def shifted_x1(dy, dx):
        if (dy, dx) not in cache1:
            cache1[(dy, dx)] = _masked_shift(x1, dy, dx, w, m_ref)
        return cache1[(dy, dx)]

    b2 = b2_ref[...]                                           # (C2, 1)
    x2p = [[None, None], [None, None]]                         # [py][px] -> (C2, S)
    for py in range(2):
        for px in range(2):
            cols = [shifted_x1(_T_OFF[py][iy], _T_OFF[px][ix])
                    for iy in range(2) for ix in range(2)]
            pm = jnp.concatenate(cols, axis=0)                 # (4*C1, S)
            y = jnp.dot(w2_ref[py, px], pm,
                        preferred_element_type=jnp.float32) + b2
            x2p[py][px] = jnp.maximum(y, 0.0)

    # ---- layer 3: ConvT 4x4 s2 p1 (no ReLU), phase-decomposed --------------
    # x2 stays parity-blocked on the 8x8 coarse grid, so every tap of the second
    # ConvT is again just a (+/-1, +/-1) coarse shift of one of the four planes.
    cache2 = {}

    def shifted_x2(pp_y, pp_x, ey, ex):
        key = (pp_y, pp_x, ey, ex)
        if key not in cache2:
            cache2[key] = _masked_shift(x2p[pp_y][pp_x], ey, ex, w, m_ref)
        return cache2[key]

    b3 = b3_ref[...]                                           # (C3, 1)
    phases = [[None] * 4 for _ in range(4)]                    # [ry][rx] -> (C3, S)
    for qy in range(2):
        for qx in range(2):
            w3qp = w3_ref[qy, qx]                              # (C3, 4*C2)
            for py in range(2):
                for px in range(2):
                    cols = []
                    for iy in range(2):
                        d_y = _T_OFF[qy][iy]
                        pp_y = (py + d_y) % 2
                        ey = (py + d_y - pp_y) // 2
                        for ix in range(2):
                            d_x = _T_OFF[qx][ix]
                            pp_x = (px + d_x) % 2
                            ex = (px + d_x - pp_x) // 2
                            cols.append(shifted_x2(pp_y, pp_x, ey, ex))
                    pm = jnp.concatenate(cols, axis=0)         # (4*C2, S)
                    y = jnp.dot(w3qp, pm,
                                preferred_element_type=jnp.float32) + b3
                    phases[2 * py + qy][2 * px + qx] = y       # (C3, S)

    # phase-major, lane-dense output: lane index = (ry*4 + rx)*S + (y*w + x)
    out = jnp.concatenate(
        [phases[ry][rx] for ry in range(4) for rx in range(4)], axis=1)  # (C3, 16*S)
    o_ref[0] = out.astype(o_ref.dtype)


# ---------------------------------------------------------------------------
# One-time weight repack (hoisted out of the jitted forward)
# ---------------------------------------------------------------------------

def _pack_convt_weight(wt):
    """PyTorch ConvTranspose2d weight (Cin, Cout, 4, 4) -> (2, 2, Cout, 4*Cin),
    parity-packed, K = (tap-major, channel-minor) on lanes."""
    rows = []
    for py in range(2):
        cols = []
        for px in range(2):
            blocks = [wt[:, :, _T_KER[py][iy], _T_KER[px][ix]].T   # (Cout, Cin)
                      for iy in range(2) for ix in range(2)]
            cols.append(jnp.concatenate(blocks, axis=1))           # (Cout, 4*Cin)
        rows.append(jnp.stack(cols, axis=0))
    return jnp.stack(rows, axis=0)                                 # (2, 2, Cout, 4*Cin)


def prepare_params(params):
    """Repack PyTorch-layout params into kernel layouts (run once, outside jit)."""
    w_dec = params["w_dec"]                                        # (C1, C0, 5, 5)
    c1, c0 = w_dec.shape[0], w_dec.shape[1]
    w1 = jnp.transpose(w_dec, (0, 2, 3, 1)).reshape(c1, 25 * c0)   # (C1, 25*C0), K on lanes
    return {
        "w1": w1,
        "b1": params["b_dec"].reshape(-1, 1),
        "w2": _pack_convt_weight(params["w_t1"]),
        "b2": params["b_t1"].reshape(-1, 1),
        "w3": _pack_convt_weight(params["w_t2"]),
        "b3": params["b_t2"].reshape(-1, 1),
    }


def _shift_masks(h, w):
    """(5, 5, 1, h*w) 0/1 masks: m[dy+2, dx+2, 0, y*w+x] = 1 iff (y+dy, x+dx) in bounds."""
    ys, xs = np.divmod(np.arange(h * w), w)
    m = np.zeros((5, 5, 1, h * w), np.float32)
    for dy in range(-2, 3):
        for dx in range(-2, 3):
            ok = (ys + dy >= 0) & (ys + dy < h) & (xs + dx >= 0) & (xs + dx < w)
            m[dy + 2, dx + 2, 0] = ok
    return m


# ---------------------------------------------------------------------------
# Forward (matches ImageRendererDecoder.forward; NCHW in / NCHW out)
# ---------------------------------------------------------------------------

@jax.jit
def image_renderer_decoder_forward(h_nchw, packed):
    B, C0, H, W = h_nchw.shape
    C3 = packed["b3"].shape[0]
    S = H * W

    x = h_nchw.reshape(B, C0, S)            # NCHW consumed directly (free reshape)
    masks = _shift_masks(H, W)              # trace-time constant

    flops = 2 * B * S * (packed["w1"].shape[0] * packed["w1"].shape[1]
                         + 4 * packed["w2"].shape[2] * packed["w2"].shape[3]
                         + 16 * packed["w3"].shape[2] * packed["w3"].shape[3])
    bytes_accessed = 4 * (x.size + masks.size + B * C3 * 16 * S
                          + sum(int(np.prod(packed[k].shape)) for k in packed))

    out_flat = pl.pallas_call(
        functools.partial(_decoder_kernel, h=H, w=W),
        out_shape=jax.ShapeDtypeStruct((B, C3, 16 * S), jnp.float32),
        grid=(B,),
        in_specs=[
            pl.BlockSpec((1, C0, S), lambda i: (i, 0, 0)),
            pl.BlockSpec(packed["w1"].shape, lambda i: (0, 0)),
            pl.BlockSpec(packed["b1"].shape, lambda i: (0, 0)),
            pl.BlockSpec(masks.shape, lambda i: (0, 0, 0, 0)),
            pl.BlockSpec(packed["w2"].shape, lambda i: (0, 0, 0, 0)),
            pl.BlockSpec(packed["b2"].shape, lambda i: (0, 0)),
            pl.BlockSpec(packed["w3"].shape, lambda i: (0, 0, 0, 0)),
            pl.BlockSpec(packed["b3"].shape, lambda i: (0, 0)),
        ],
        out_specs=pl.BlockSpec((1, C3, 16 * S), lambda i: (i, 0, 0)),
        compiler_params=pltpu.CompilerParams(
            dimension_semantics=("parallel",),      # v7x: one batch elem per TC
            vmem_limit_bytes=16 * 1024 * 1024),
        cost_estimate=pl.CostEstimate(flops=int(flops), transcendentals=0,
                                      bytes_accessed=int(bytes_accessed)),
    )(x, packed["w1"], packed["b1"], masks,
      packed["w2"], packed["b2"], packed["w3"], packed["b3"])

    # phase-major -> raster NCHW: one tiny fused reshape/transpose (B*C3*16*S*4 bytes).
    out = out_flat.reshape(B, C3, 4, 4, H, W)
    out = jnp.transpose(out, (0, 1, 4, 2, 5, 3)).reshape(B, C3, 4 * H, 4 * W)
    return out


# ---------------------------------------------------------------------------
# Pure-JAX reference (PyTorch semantics) for validation
# ---------------------------------------------------------------------------

def _ref_conv2d(x, w, b, pad):
    y = lax.conv_general_dilated(x, w, (1, 1), [(pad, pad), (pad, pad)],
                                 dimension_numbers=("NCHW", "OIHW", "NCHW"),
                                 precision=lax.Precision.HIGHEST)
    return y + b[None, :, None, None]


def _ref_convT2d(x, w, b):
    wt = jnp.transpose(w, (1, 0, 2, 3))[:, :, ::-1, ::-1]
    y = lax.conv_general_dilated(x, wt, (1, 1), [(2, 2), (2, 2)],
                                 lhs_dilation=(2, 2),
                                 dimension_numbers=("NCHW", "OIHW", "NCHW"),
                                 precision=lax.Precision.HIGHEST)
    return y + b[None, :, None, None]


def _reference_forward(h, params):
    x = jax.nn.relu(_ref_conv2d(h, params["w_dec"], params["b_dec"], pad=2))
    x = jax.nn.relu(_ref_convT2d(x, params["w_t1"], params["b_t1"]))
    return _ref_convT2d(x, params["w_t2"], params["b_t2"])


# ---------------------------------------------------------------------------

if __name__ == "__main__":
    B, lstm_dim, h_dim, im_channels, H, W = 2, 16, 8, 3, 8, 8

    key = jax.random.PRNGKey(0)
    ks = jax.random.split(key, 7)
    h = jax.random.normal(ks[0], (B, lstm_dim, H, W), jnp.float32)
    params = {
        # Conv2d(lstm_dim, h_dim, 5): weight (h_dim, lstm_dim, 5, 5), bias (h_dim,)
        "w_dec": 0.1 * jax.random.normal(ks[1], (h_dim, lstm_dim, 5, 5), jnp.float32),
        "b_dec": 0.1 * jax.random.normal(ks[2], (h_dim,), jnp.float32),
        # ConvTranspose2d(h_dim, 2*h_dim, 4): weight (h_dim, 2*h_dim, 4, 4)
        "w_t1": 0.1 * jax.random.normal(ks[3], (h_dim, 2 * h_dim, 4, 4), jnp.float32),
        "b_t1": 0.1 * jax.random.normal(ks[4], (2 * h_dim,), jnp.float32),
        # ConvTranspose2d(2*h_dim, im_channels, 4): weight (2*h_dim, im_channels, 4, 4)
        "w_t2": 0.1 * jax.random.normal(ks[5], (2 * h_dim, im_channels, 4, 4), jnp.float32),
        "b_t2": 0.1 * jax.random.normal(ks[6], (im_channels,), jnp.float32),
    }

    packed = prepare_params(params)            # one-time repack, outside the jit
    out = jax.block_until_ready(image_renderer_decoder_forward(h, packed))
    assert out.shape == (B, im_channels, 4 * H, 4 * W), out.shape

    ref = jax.block_until_ready(_reference_forward(h, params))
    err = float(jnp.max(jnp.abs(out - ref)))
    # tightened from 1e-3 (all-f32 path vs Precision.HIGHEST reference)
    if not np.isfinite(err) or err > 1e-4:
        raise AssertionError(f"Pallas output mismatch vs reference, max abs err = {err}")

    print("KERNEL_OK")
</pallas_src>

<mosaic_0001>
module attributes {stable_mosaic.version = 11 : i64} {
  func.func @_decoder_kernel(%arg0: i32, %arg1: memref<1x16x64xf32, #tpu.memory_space<vmem>>, %arg2: memref<8x400xf32, #tpu.memory_space<vmem>>, %arg3: memref<8x1xf32, #tpu.memory_space<vmem>>, %arg4: memref<5x5x1x64xf32, #tpu.memory_space<vmem>>, %arg5: memref<2x2x16x32xf32, #tpu.memory_space<vmem>>, %arg6: memref<16x1xf32, #tpu.memory_space<vmem>>, %arg7: memref<2x2x3x64xf32, #tpu.memory_space<vmem>>, %arg8: memref<3x1xf32, #tpu.memory_space<vmem>>, %arg9: memref<1x3x1024xf32, #tpu.memory_space<vmem>>) attributes {dimension_semantics = [#tpu.dimension_semantics<parallel>], iteration_bounds = array<i64: 2>, scalar_prefetch = 0 : i64, scratch_operands = 0 : i64, tpu.core_type = #tpu.core_type<tc>, window_params = [{transform_indices = @transform_0, window_bounds = array<i64: 1, 16, 64>}, {pipeline_mode = #tpu.pipeline_mode<synchronous>, transform_indices = @transform_1, window_bounds = array<i64: 8, 400>}, {pipeline_mode = #tpu.pipeline_mode<synchronous>, transform_indices = @transform_2, window_bounds = array<i64: 8, 1>}, {pipeline_mode = #tpu.pipeline_mode<synchronous>, transform_indices = @transform_3, window_bounds = array<i64: 5, 5, 1, 64>}, {pipeline_mode = #tpu.pipeline_mode<synchronous>, transform_indices = @transform_4, window_bounds = array<i64: 2, 2, 16, 32>}, {pipeline_mode = #tpu.pipeline_mode<synchronous>, transform_indices = @transform_5, window_bounds = array<i64: 16, 1>}, {pipeline_mode = #tpu.pipeline_mode<synchronous>, transform_indices = @transform_6, window_bounds = array<i64: 2, 2, 3, 64>}, {pipeline_mode = #tpu.pipeline_mode<synchronous>, transform_indices = @transform_7, window_bounds = array<i64: 3, 1>}, {transform_indices = @transform_8, window_bounds = array<i64: 1, 3, 1024>}]} {
    %c0 = arith.constant 0 : index
    %c0_0 = arith.constant 0 : index
    %c0_1 = arith.constant 0 : index
    %0 = vector.load %arg1[%c0, %c0_0, %c0_1] : memref<1x16x64xf32, #tpu.memory_space<vmem>>, vector<1x16x64xf32>
    %1 = vector.shape_cast %0 : vector<1x16x64xf32> to vector<16x64xf32>
    %2 = vector.extract_strided_slice %1 {offsets = [0, 46], sizes = [16, 18], strides = [1, 1]} : vector<16x64xf32> to vector<16x18xf32>
    %3 = vector.extract_strided_slice %1 {offsets = [0, 0], sizes = [16, 46], strides = [1, 1]} : vector<16x64xf32> to vector<16x46xf32>
    %4 = tpu.concatenate %2, %3 in 1 : vector<16x18xf32>, vector<16x46xf32> -> vector<16x64xf32>
    %c0_2 = arith.constant 0 : index
    %c0_3 = arith.constant 0 : index
    %c0_4 = arith.constant 0 : index
    %c0_5 = arith.constant 0 : index
    %5 = vector.load %arg4[%c0_2, %c0_3, %c0_4, %c0_5] : memref<5x5x1x64xf32, #tpu.memory_space<vmem>>, vector<1x1x1x64xf32>
    %6 = vector.shape_cast %5 : vector<1x1x1x64xf32> to vector<1x64xf32>
    %7 = vector.broadcast %6 : vector<1x64xf32> to vector<16x64xf32>
    %8 = arith.mulf %4, %7 : vector<16x64xf32>
    %9 = vector.extract_strided_slice %1 {offsets = [0, 47], sizes = [16, 17], strides = [1, 1]} : vector<16x64xf32> to vector<16x17xf32>
    %10 = vector.extract_strided_slice %1 {offsets = [0, 0], sizes = [16, 47], strides = [1, 1]} : vector<16x64xf32> to vector<16x47xf32>
    %11 = tpu.concatenate %9, %10 in 1 : vector<16x17xf32>, vector<16x47xf32> -> vector<16x64xf32>
    %c0_6 = arith.constant 0 : index
    %c1 = arith.constant 1 : index
    %c0_7 = arith.constant 0 : index
    %c0_8 = arith.constant 0 : index
    %12 = vector.load %arg4[%c0_6, %c1, %c0_7, %c0_8] : memref<5x5x1x64xf32, #tpu.memory_space<vmem>>, vector<1x1x1x64xf32>
    %13 = vector.shape_cast %12 : vector<1x1x1x64xf32> to vector<1x64xf32>
    %14 = vector.broadcast %13 : vector<1x64xf32> to vector<16x64xf32>
    %15 = arith.mulf %11, %14 : vector<16x64xf32>
    %16 = vector.extract_strided_slice %1 {offsets = [0, 48], sizes = [16, 16], strides = [1, 1]} : vector<16x64xf32> to vector<16x16xf32>
    %17 = vector.extract_strided_slice %1 {offsets = [0, 0], sizes = [16, 48], strides = [1, 1]} : vector<16x64xf32> to vector<16x48xf32>
    %18 = tpu.concatenate %16, %17 in 1 : vector<16x16xf32>, vector<16x48xf32> -> vector<16x64xf32>
    %c0_9 = arith.constant 0 : index
    %c2 = arith.constant 2 : index
    %c0_10 = arith.constant 0 : index
    %c0_11 = arith.constant 0 : index
    %19 = vector.load %arg4[%c0_9, %c2, %c0_10, %c0_11] : memref<5x5x1x64xf32, #tpu.memory_space<vmem>>, vector<1x1x1x64xf32>
    %20 = vector.shape_cast %19 : vector<1x1x1x64xf32> to vector<1x64xf32>
    %21 = vector.broadcast %20 : vector<1x64xf32> to vector<16x64xf32>
    %22 = arith.mulf %18, %21 : vector<16x64xf32>
    %23 = vector.extract_strided_slice %1 {offsets = [0, 49], sizes = [16, 15], strides = [1, 1]} : vector<16x64xf32> to vector<16x15xf32>
    %24 = vector.extract_strided_slice %1 {offsets = [0, 0], sizes = [16, 49], strides = [1, 1]} : vector<16x64xf32> to vector<16x49xf32>
    %25 = tpu.concatenate %23, %24 in 1 : vector<16x15xf32>, vector<16x49xf32> -> vector<16x64xf32>
    %c0_12 = arith.constant 0 : index
    %c3 = arith.constant 3 : index
    %c0_13 = arith.constant 0 : index
    %c0_14 = arith.constant 0 : index
    %26 = vector.load %arg4[%c0_12, %c3, %c0_13, %c0_14] : memref<5x5x1x64xf32, #tpu.memory_space<vmem>>, vector<1x1x1x64xf32>
    %27 = vector.shape_cast %26 : vector<1x1x1x64xf32> to vector<1x64xf32>
    %28 = vector.broadcast %27 : vector<1x64xf32> to vector<16x64xf32>
    %29 = arith.mulf %25, %28 : vector<16x64xf32>
    %30 = vector.extract_strided_slice %1 {offsets = [0, 50], sizes = [16, 14], strides = [1, 1]} : vector<16x64xf32> to vector<16x14xf32>
    %31 = vector.extract_strided_slice %1 {offsets = [0, 0], sizes = [16, 50], strides = [1, 1]} : vector<16x64xf32> to vector<16x50xf32>
    %32 = tpu.concatenate %30, %31 in 1 : vector<16x14xf32>, vector<16x50xf32> -> vector<16x64xf32>
    %c0_15 = arith.constant 0 : index
    %c4 = arith.constant 4 : index
    %c0_16 = arith.constant 0 : index
    %c0_17 = arith.constant 0 : index
    %33 = vector.load %arg4[%c0_15, %c4, %c0_16, %c0_17] : memref<5x5x1x64xf32, #tpu.memory_space<vmem>>, vector<1x1x1x64xf32>
    %34 = vector.shape_cast %33 : vector<1x1x1x64xf32> to vector<1x64xf32>
    %35 = vector.broadcast %34 : vector<1x64xf32> to vector<16x64xf32>
    %36 = arith.mulf %32, %35 : vector<16x64xf32>
    %37 = vector.extract_strided_slice %1 {offsets = [0, 54], sizes = [16, 10], strides = [1, 1]} : vector<16x64xf32> to vector<16x10xf32>
    %38 = vector.extract_strided_slice %1 {offsets = [0, 0], sizes = [16, 54], strides = [1, 1]} : vector<16x64xf32> to vector<16x54xf32>
    %39 = tpu.concatenate %37, %38 in 1 : vector<16x10xf32>, vector<16x54xf32> -> vector<16x64xf32>
    %c1_18 = arith.constant 1 : index
    %c0_19 = arith.constant 0 : index
    %c0_20 = arith.constant 0 : index
    %c0_21 = arith.constant 0 : index
    %40 = vector.load %arg4[%c1_18, %c0_19, %c0_20, %c0_21] : memref<5x5x1x64xf32, #tpu.memory_space<vmem>>, vector<1x1x1x64xf32>
    %41 = vector.shape_cast %40 : vector<1x1x1x64xf32> to vector<1x64xf32>
    %42 = vector.broadcast %41 : vector<1x64xf32> to vector<16x64xf32>
    %43 = arith.mulf %39, %42 : vector<16x64xf32>
    %44 = vector.extract_strided_slice %1 {offsets = [0, 55], sizes = [16, 9], strides = [1, 1]} : vector<16x64xf32> to vector<16x9xf32>
    %45 = vector.extract_strided_slice %1 {offsets = [0, 0], sizes = [16, 55], strides = [1, 1]} : vector<16x64xf32> to vector<16x55xf32>
    %46 = tpu.concatenate %44, %45 in 1 : vector<16x9xf32>, vector<16x55xf32> -> vector<16x64xf32>
    %c1_22 = arith.constant 1 : index
    %c1_23 = arith.constant 1 : index
    %c0_24 = arith.constant 0 : index
    %c0_25 = arith.constant 0 : index
    %47 = vector.load %arg4[%c1_22, %c1_23, %c0_24, %c0_25] : memref<5x5x1x64xf32, #tpu.memory_space<vmem>>, vector<1x1x1x64xf32>
    %48 = vector.shape_cast %47 : vector<1x1x1x64xf32> to vector<1x64xf32>
    %49 = vector.broadcast %48 : vector<1x64xf32> to vector<16x64xf32>
    %50 = arith.mulf %46, %49 : vector<16x64xf32>
    %51 = vector.extract_strided_slice %1 {offsets = [0, 56], sizes = [16, 8], strides = [1, 1]} : vector<16x64xf32> to vector<16x8xf32>
    %52 = vector.extract_strided_slice %1 {offsets = [0, 0], sizes = [16, 56], strides = [1, 1]} : vector<16x64xf32> to vector<16x56xf32>
    %53 = tpu.concatenate %51, %52 in 1 : vector<16x8xf32>, vector<16x56xf32> -> vector<16x64xf32>
    %c1_26 = arith.constant 1 : index
    %c2_27 = arith.constant 2 : index
    %c0_28 = arith.constant 0 : index
    %c0_29 = arith.constant 0 : index
    %54 = vector.load %arg4[%c1_26, %c2_27, %c0_28, %c0_29] : memref<5x5x1x64xf32, #tpu.memory_space<vmem>>, vector<1x1x1x64xf32>
    %55 = vector.shape_cast %54 : vector<1x1x1x64xf32> to vector<1x64xf32>
    %56 = vector.broadcast %55 : vector<1x64xf32> to vector<16x64xf32>
    %57 = arith.mulf %53, %56 : vector<16x64xf32>
    %58 = vector.extract_strided_slice %1 {offsets = [0, 57], sizes = [16, 7], strides = [1, 1]} : vector<16x64xf32> to vector<16x7xf32>
    %59 = vector.extract_strided_slice %1 {offsets = [0, 0], sizes = [16, 57], strides = [1, 1]} : vector<16x64xf32> to vector<16x57xf32>
    %60 = tpu.concatenate %58, %59 in 1 : vector<16x7xf32>, vector<16x57xf32> -> vector<16x64xf32>
    %c1_30 = arith.constant 1 : index
    %c3_31 = arith.constant 3 : index
    %c0_32 = arith.constant 0 : index
    %c0_33 = arith.constant 0 : index
    %61 = vector.load %arg4[%c1_30, %c3_31, %c0_32, %c0_33] : memref<5x5x1x64xf32, #tpu.memory_space<vmem>>, vector<1x1x1x64xf32>
    %62 = vector.shape_cast %61 : vector<1x1x1x64xf32> to vector<1x64xf32>
    %63 = vector.broadcast %62 : vector<1x64xf32> to vector<16x64xf32>
    %64 = arith.mulf %60, %63 : vector<16x64xf32>
    %65 = vector.extract_strided_slice %1 {offsets = [0, 58], sizes = [16, 6], strides = [1, 1]} : vector<16x64xf32> to vector<16x6xf32>
    %66 = vector.extract_strided_slice %1 {offsets = [0, 0], sizes = [16, 58], strides = [1, 1]} : vector<16x64xf32> to vector<16x58xf32>
    %67 = tpu.concatenate %65, %66 in 1 : vector<16x6xf32>, vector<16x58xf32> -> vector<16x64xf32>
    %c1_34 = arith.constant 1 : index
    %c4_35 = arith.constant 4 : index
    %c0_36 = arith.constant 0 : index
    %c0_37 = arith.constant 0 : index
    %68 = vector.load %arg4[%c1_34, %c4_35, %c0_36, %c0_37] : memref<5x5x1x64xf32, #tpu.memory_space<vmem>>, vector<1x1x1x64xf32>
    %69 = vector.shape_cast %68 : vector<1x1x1x64xf32> to vector<1x64xf32>
    %70 = vector.broadcast %69 : vector<1x64xf32> to vector<16x64xf32>
    %71 = arith.mulf %67, %70 : vector<16x64xf32>
    %72 = vector.extract_strided_slice %1 {offsets = [0, 62], sizes = [16, 2], strides = [1, 1]} : vector<16x64xf32> to vector<16x2xf32>
    %73 = vector.extract_strided_slice %1 {offsets = [0, 0], sizes = [16, 62], strides = [1, 1]} : vector<16x64xf32> to vector<16x62xf32>
    %74 = tpu.concatenate %72, %73 in 1 : vector<16x2xf32>, vector<16x62xf32> -> vector<16x64xf32>
    %c2_38 = arith.constant 2 : index
    %c0_39 = arith.constant 0 : index
    %c0_40 = arith.constant 0 : index
    %c0_41 = arith.constant 0 : index
    %75 = vector.load %arg4[%c2_38, %c0_39, %c0_40, %c0_41] : memref<5x5x1x64xf32, #tpu.memory_space<vmem>>, vector<1x1x1x64xf32>
    %76 = vector.shape_cast %75 : vector<1x1x1x64xf32> to vector<1x64xf32>
    %77 = vector.broadcast %76 : vector<1x64xf32> to vector<16x64xf32>
    %78 = arith.mulf %74, %77 : vector<16x64xf32>
    %79 = vector.extract_strided_slice %1 {offsets = [0, 63], sizes = [16, 1], strides = [1, 1]} : vector<16x64xf32> to vector<16x1xf32>
    %80 = vector.extract_strided_slice %1 {offsets = [0, 0], sizes = [16, 63], strides = [1, 1]} : vector<16x64xf32> to vector<16x63xf32>
    %81 = tpu.concatenate %79, %80 in 1 : vector<16x1xf32>, vector<16x63xf32> -> vector<16x64xf32>
    %c2_42 = arith.constant 2 : index
    %c1_43 = arith.constant 1 : index
    %c0_44 = arith.constant 0 : index
    %c0_45 = arith.constant 0 : index
    %82 = vector.load %arg4[%c2_42, %c1_43, %c0_44, %c0_45] : memref<5x5x1x64xf32, #tpu.memory_space<vmem>>, vector<1x1x1x64xf32>
    %83 = vector.shape_cast %82 : vector<1x1x1x64xf32> to vector<1x64xf32>
    %84 = vector.broadcast %83 : vector<1x64xf32> to vector<16x64xf32>
    %85 = arith.mulf %81, %84 : vector<16x64xf32>
    %86 = vector.extract_strided_slice %1 {offsets = [0, 1], sizes = [16, 63], strides = [1, 1]} : vector<16x64xf32> to vector<16x63xf32>
    %87 = vector.extract_strided_slice %1 {offsets = [0, 0], sizes = [16, 1], strides = [1, 1]} : vector<16x64xf32> to vector<16x1xf32>
    %88 = tpu.concatenate %86, %87 in 1 : vector<16x63xf32>, vector<16x1xf32> -> vector<16x64xf32>
    %c2_46 = arith.constant 2 : index
    %c3_47 = arith.constant 3 : index
    %c0_48 = arith.constant 0 : index
    %c0_49 = arith.constant 0 : index
    %89 = vector.load %arg4[%c2_46, %c3_47, %c0_48, %c0_49] : memref<5x5x1x64xf32, #tpu.memory_space<vmem>>, vector<1x1x1x64xf32>
    %90 = vector.shape_cast %89 : vector<1x1x1x64xf32> to vector<1x64xf32>
    %91 = vector.broadcast %90 : vector<1x64xf32> to vector<16x64xf32>
    %92 = arith.mulf %88, %91 : vector<16x64xf32>
    %93 = vector.extract_strided_slice %1 {offsets = [0, 2], sizes = [16, 62], strides = [1, 1]} : vector<16x64xf32> to vector<16x62xf32>
    %94 = vector.extract_strided_slice %1 {offsets = [0, 0], sizes = [16, 2], strides = [1, 1]} : vector<16x64xf32> to vector<16x2xf32>
    %95 = tpu.concatenate %93, %94 in 1 : vector<16x62xf32>, vector<16x2xf32> -> vector<16x64xf32>
    %c2_50 = arith.constant 2 : index
    %c4_51 = arith.constant 4 : index
    %c0_52 = arith.constant 0 : index
    %c0_53 = arith.constant 0 : index
    %96 = vector.load %arg4[%c2_50, %c4_51, %c0_52, %c0_53] : memref<5x5x1x64xf32, #tpu.memory_space<vmem>>, vector<1x1x1x64xf32>
    %97 = vector.shape_cast %96 : vector<1x1x1x64xf32> to vector<1x64xf32>
    %98 = vector.broadcast %97 : vector<1x64xf32> to vector<16x64xf32>
    %99 = arith.mulf %95, %98 : vector<16x64xf32>
    %100 = vector.extract_strided_slice %1 {offsets = [0, 6], sizes = [16, 58], strides = [1, 1]} : vector<16x64xf32> to vector<16x58xf32>
    %101 = vector.extract_strided_slice %1 {offsets = [0, 0], sizes = [16, 6], strides = [1, 1]} : vector<16x64xf32> to vector<16x6xf32>
    %102 = tpu.concatenate %100, %101 in 1 : vector<16x58xf32>, vector<16x6xf32> -> vector<16x64xf32>
    %c3_54 = arith.constant 3 : index
    %c0_55 = arith.constant 0 : index
    %c0_56 = arith.constant 0 : index
    %c0_57 = arith.constant 0 : index
    %103 = vector.load %arg4[%c3_54, %c0_55, %c0_56, %c0_57] : memref<5x5x1x64xf32, #tpu.memory_space<vmem>>, vector<1x1x1x64xf32>
    %104 = vector.shape_cast %103 : vector<1x1x1x64xf32> to vector<1x64xf32>
    %105 = vector.broadcast %104 : vector<1x64xf32> to vector<16x64xf32>
    %106 = arith.mulf %102, %105 : vector<16x64xf32>
    %107 = vector.extract_strided_slice %1 {offsets = [0, 7], sizes = [16, 57], strides = [1, 1]} : vector<16x64xf32> to vector<16x57xf32>
    %108 = vector.extract_strided_slice %1 {offsets = [0, 0], sizes = [16, 7], strides = [1, 1]} : vector<16x64xf32> to vector<16x7xf32>
    %109 = tpu.concatenate %107, %108 in 1 : vector<16x57xf32>, vector<16x7xf32> -> vector<16x64xf32>
    %c3_58 = arith.constant 3 : index
    %c1_59 = arith.constant 1 : index
    %c0_60 = arith.constant 0 : index
    %c0_61 = arith.constant 0 : index
    %110 = vector.load %arg4[%c3_58, %c1_59, %c0_60, %c0_61] : memref<5x5x1x64xf32, #tpu.memory_space<vmem>>, vector<1x1x1x64xf32>
    %111 = vector.shape_cast %110 : vector<1x1x1x64xf32> to vector<1x64xf32>
    %112 = vector.broadcast %111 : vector<1x64xf32> to vector<16x64xf32>
    %113 = arith.mulf %109, %112 : vector<16x64xf32>
    %114 = vector.extract_strided_slice %1 {offsets = [0, 8], sizes = [16, 56], strides = [1, 1]} : vector<16x64xf32> to vector<16x56xf32>
    %115 = vector.extract_strided_slice %1 {offsets = [0, 0], sizes = [16, 8], strides = [1, 1]} : vector<16x64xf32> to vector<16x8xf32>
    %116 = tpu.concatenate %114, %115 in 1 : vector<16x56xf32>, vector<16x8xf32> -> vector<16x64xf32>
    %c3_62 = arith.constant 3 : index
    %c2_63 = arith.constant 2 : index
    %c0_64 = arith.constant 0 : index
    %c0_65 = arith.constant 0 : index
    %117 = vector.load %arg4[%c3_62, %c2_63, %c0_64, %c0_65] : memref<5x5x1x64xf32, #tpu.memory_space<vmem>>, vector<1x1x1x64xf32>
    %118 = vector.shape_cast %117 : vector<1x1x1x64xf32> to vector<1x64xf32>
    %119 = vector.broadcast %118 : vector<1x64xf32> to vector<16x64xf32>
    %120 = arith.mulf %116, %119 : vector<16x64xf32>
    %121 = vector.extract_strided_slice %1 {offsets = [0, 9], sizes = [16, 55], strides = [1, 1]} : vector<16x64xf32> to vector<16x55xf32>
    %122 = vector.extract_strided_slice %1 {offsets = [0, 0], sizes = [16, 9], strides = [1, 1]} : vector<16x64xf32> to vector<16x9xf32>
    %123 = tpu.concatenate %121, %122 in 1 : vector<16x55xf32>, vector<16x9xf32> -> vector<16x64xf32>
    %c3_66 = arith.constant 3 : index
    %c3_67 = arith.constant 3 : index
    %c0_68 = arith.constant 0 : index
    %c0_69 = arith.constant 0 : index
    %124 = vector.load %arg4[%c3_66, %c3_67, %c0_68, %c0_69] : memref<5x5x1x64xf32, #tpu.memory_space<vmem>>, vector<1x1x1x64xf32>
    %125 = vector.shape_cast %124 : vector<1x1x1x64xf32> to vector<1x64xf32>
    %126 = vector.broadcast %125 : vector<1x64xf32> to vector<16x64xf32>
    %127 = arith.mulf %123, %126 : vector<16x64xf32>
    %128 = vector.extract_strided_slice %1 {offsets = [0, 10], sizes = [16, 54], strides = [1, 1]} : vector<16x64xf32> to vector<16x54xf32>
    %129 = vector.extract_strided_slice %1 {offsets = [0, 0], sizes = [16, 10], strides = [1, 1]} : vector<16x64xf32> to vector<16x10xf32>
    %130 = tpu.concatenate %128, %129 in 1 : vector<16x54xf32>, vector<16x10xf32> -> vector<16x64xf32>
    %c3_70 = arith.constant 3 : index
    %c4_71 = arith.constant 4 : index
    %c0_72 = arith.constant 0 : index
    %c0_73 = arith.constant 0 : index
    %131 = vector.load %arg4[%c3_70, %c4_71, %c0_72, %c0_73] : memref<5x5x1x64xf32, #tpu.memory_space<vmem>>, vector<1x1x1x64xf32>
    %132 = vector.shape_cast %131 : vector<1x1x1x64xf32> to vector<1x64xf32>
    %133 = vector.broadcast %132 : vector<1x64xf32> to vector<16x64xf32>
    %134 = arith.mulf %130, %133 : vector<16x64xf32>
    %135 = vector.extract_strided_slice %1 {offsets = [0, 14], sizes = [16, 50], strides = [1, 1]} : vector<16x64xf32> to vector<16x50xf32>
    %136 = vector.extract_strided_slice %1 {offsets = [0, 0], sizes = [16, 14], strides = [1, 1]} : vector<16x64xf32> to vector<16x14xf32>
    %137 = tpu.concatenate %135, %136 in 1 : vector<16x50xf32>, vector<16x14xf32> -> vector<16x64xf32>
    %c4_74 = arith.constant 4 : index
    %c0_75 = arith.constant 0 : index
    %c0_76 = arith.constant 0 : index
    %c0_77 = arith.constant 0 : index
    %138 = vector.load %arg4[%c4_74, %c0_75, %c0_76, %c0_77] : memref<5x5x1x64xf32, #tpu.memory_space<vmem>>, vector<1x1x1x64xf32>
    %139 = vector.shape_cast %138 : vector<1x1x1x64xf32> to vector<1x64xf32>
    %140 = vector.broadcast %139 : vector<1x64xf32> to vector<16x64xf32>
    %141 = arith.mulf %137, %140 : vector<16x64xf32>
    %142 = vector.extract_strided_slice %1 {offsets = [0, 15], sizes = [16, 49], strides = [1, 1]} : vector<16x64xf32> to vector<16x49xf32>
    %143 = vector.extract_strided_slice %1 {offsets = [0, 0], sizes = [16, 15], strides = [1, 1]} : vector<16x64xf32> to vector<16x15xf32>
    %144 = tpu.concatenate %142, %143 in 1 : vector<16x49xf32>, vector<16x15xf32> -> vector<16x64xf32>
    %c4_78 = arith.constant 4 : index
    %c1_79 = arith.constant 1 : index
    %c0_80 = arith.constant 0 : index
    %c0_81 = arith.constant 0 : index
    %145 = vector.load %arg4[%c4_78, %c1_79, %c0_80, %c0_81] : memref<5x5x1x64xf32, #tpu.memory_space<vmem>>, vector<1x1x1x64xf32>
    %146 = vector.shape_cast %145 : vector<1x1x1x64xf32> to vector<1x64xf32>
    %147 = vector.broadcast %146 : vector<1x64xf32> to vector<16x64xf32>
    %148 = arith.mulf %144, %147 : vector<16x64xf32>
    %149 = vector.extract_strided_slice %1 {offsets = [0, 16], sizes = [16, 48], strides = [1, 1]} : vector<16x64xf32> to vector<16x48xf32>
    %150 = vector.extract_strided_slice %1 {offsets = [0, 0], sizes = [16, 16], strides = [1, 1]} : vector<16x64xf32> to vector<16x16xf32>
    %151 = tpu.concatenate %149, %150 in 1 : vector<16x48xf32>, vector<16x16xf32> -> vector<16x64xf32>
    %c4_82 = arith.constant 4 : index
    %c2_83 = arith.constant 2 : index
    %c0_84 = arith.constant 0 : index
    %c0_85 = arith.constant 0 : index
    %152 = vector.load %arg4[%c4_82, %c2_83, %c0_84, %c0_85] : memref<5x5x1x64xf32, #tpu.memory_space<vmem>>, vector<1x1x1x64xf32>
    %153 = vector.shape_cast %152 : vector<1x1x1x64xf32> to vector<1x64xf32>
    %154 = vector.broadcast %153 : vector<1x64xf32> to vector<16x64xf32>
    %155 = arith.mulf %151, %154 : vector<16x64xf32>
    %156 = vector.extract_strided_slice %1 {offsets = [0, 17], sizes = [16, 47], strides = [1, 1]} : vector<16x64xf32> to vector<16x47xf32>
    %157 = vector.extract_strided_slice %1 {offsets = [0, 0], sizes = [16, 17], strides = [1, 1]} : vector<16x64xf32> to vector<16x17xf32>
    %158 = tpu.concatenate %156, %157 in 1 : vector<16x47xf32>, vector<16x17xf32> -> vector<16x64xf32>
    %c4_86 = arith.constant 4 : index
    %c3_87 = arith.constant 3 : index
    %c0_88 = arith.constant 0 : index
    %c0_89 = arith.constant 0 : index
    %159 = vector.load %arg4[%c4_86, %c3_87, %c0_88, %c0_89] : memref<5x5x1x64xf32, #tpu.memory_space<vmem>>, vector<1x1x1x64xf32>
    %160 = vector.shape_cast %159 : vector<1x1x1x64xf32> to vector<1x64xf32>
    %161 = vector.broadcast %160 : vector<1x64xf32> to vector<16x64xf32>
    %162 = arith.mulf %158, %161 : vector<16x64xf32>
    %163 = vector.extract_strided_slice %1 {offsets = [0, 18], sizes = [16, 46], strides = [1, 1]} : vector<16x64xf32> to vector<16x46xf32>
    %164 = vector.extract_strided_slice %1 {offsets = [0, 0], sizes = [16, 18], strides = [1, 1]} : vector<16x64xf32> to vector<16x18xf32>
    %165 = tpu.concatenate %163, %164 in 1 : vector<16x46xf32>, vector<16x18xf32> -> vector<16x64xf32>
    %c4_90 = arith.constant 4 : index
    %c4_91 = arith.constant 4 : index
    %c0_92 = arith.constant 0 : index
    %c0_93 = arith.constant 0 : index
    %166 = vector.load %arg4[%c4_90, %c4_91, %c0_92, %c0_93] : memref<5x5x1x64xf32, #tpu.memory_space<vmem>>, vector<1x1x1x64xf32>
    %167 = vector.shape_cast %166 : vector<1x1x1x64xf32> to vector<1x64xf32>
    %168 = vector.broadcast %167 : vector<1x64xf32> to vector<16x64xf32>
    %169 = arith.mulf %165, %168 : vector<16x64xf32>
    %170 = tpu.concatenate %8, %15, %22, %29, %36, %43, %50, %57, %64, %71, %78, %85, %1, %92, %99, %106 in 0 : vector<16x64xf32>, vector<16x64xf32>, vector<16x64xf32>, vector<16x64xf32>, vector<16x64xf32>, vector<16x64xf32>, vector<16x64xf32>, vector<16x64xf32>, vector<16x64xf32>, vector<16x64xf32>, vector<16x64xf32>, vector<16x64xf32>, vector<16x64xf32>, vector<16x64xf32>, vector<16x64xf32>, vector<16x64xf32> -> vector<256x64xf32>
    %171 = tpu.concatenate %113, %120, %127, %134, %141, %148, %155, %162, %169 in 0 : vector<16x64xf32>, vector<16x64xf32>, vector<16x64xf32>, vector<16x64xf32>, vector<16x64xf32>, vector<16x64xf32>, vector<16x64xf32>, vector<16x64xf32>, vector<16x64xf32> -> vector<144x64xf32>
    %172 = tpu.concatenate %170, %171 in 0 : vector<256x64xf32>, vector<144x64xf32> -> vector<400x64xf32>
    %c0_94 = arith.constant 0 : index
    %c0_95 = arith.constant 0 : index
    %173 = vector.load %arg3[%c0_94, %c0_95] : memref<8x1xf32, #tpu.memory_space<vmem>>, vector<8x1xf32>
    %c0_96 = arith.constant 0 : index
    %c0_97 = arith.constant 0 : index
    %174 = vector.load %arg2[%c0_96, %c0_97] : memref<8x400xf32, #tpu.memory_space<vmem>>, vector<8x400xf32>
    %cst = arith.constant dense<0.000000e+00> : vector<8x64xf32>
    %175 = tpu.matmul %174, %172, %cst {dimension_numbers = #tpu.dot_dimension_numbers<[1], [0], [0], [1], [0, 0, 1, 1], [], []>} : vector<8x400xf32>, vector<400x64xf32>, vector<8x64xf32> -> vector<8x64xf32>
    %176 = vector.broadcast %173 : vector<8x1xf32> to vector<8x64xf32>
    %177 = arith.addf %175, %176 : vector<8x64xf32>
    %cst_98 = arith.constant 0.000000e+00 : f32
    %178 = vector.broadcast %cst_98 : f32 to vector<8x64xf32>
    %179 = arith.maximumf %177, %178 : vector<8x64xf32>
    %c0_99 = arith.constant 0 : index
    %c0_100 = arith.constant 0 : index
    %180 = vector.load %arg6[%c0_99, %c0_100] : memref<16x1xf32, #tpu.memory_space<vmem>>, vector<16x1xf32>
    %181 = vector.extract_strided_slice %179 {offsets = [0, 63], sizes = [8, 1], strides = [1, 1]} : vector<8x64xf32> to vector<8x1xf32>
    %182 = vector.extract_strided_slice %179 {offsets = [0, 0], sizes = [8, 63], strides = [1, 1]} : vector<8x64xf32> to vector<8x63xf32>
    %183 = tpu.concatenate %181, %182 in 1 : vector<8x1xf32>, vector<8x63xf32> -> vector<8x64xf32>
    %c2_101 = arith.constant 2 : index
    %c1_102 = arith.constant 1 : index
    %c0_103 = arith.constant 0 : index
    %c0_104 = arith.constant 0 : index
    %184 = vector.load %arg4[%c2_101, %c1_102, %c0_103, %c0_104] : memref<5x5x1x64xf32, #tpu.memory_space<vmem>>, vector<1x1x1x64xf32>
    %185 = vector.shape_cast %184 : vector<1x1x1x64xf32> to vector<1x64xf32>
    %186 = vector.broadcast %185 : vector<1x64xf32> to vector<8x64xf32>
    %187 = arith.mulf %183, %186 : vector<8x64xf32>
    %188 = vector.extract_strided_slice %179 {offsets = [0, 56], sizes = [8, 8], strides = [1, 1]} : vector<8x64xf32> to vector<8x8xf32>
    %189 = vector.extract_strided_slice %179 {offsets = [0, 0], sizes = [8, 56], strides = [1, 1]} : vector<8x64xf32> to vector<8x56xf32>
    %190 = tpu.concatenate %188, %189 in 1 : vector<8x8xf32>, vector<8x56xf32> -> vector<8x64xf32>
    %c1_105 = arith.constant 1 : index
    %c2_106 = arith.constant 2 : index
    %c0_107 = arith.constant 0 : index
    %c0_108 = arith.constant 0 : index
    %191 = vector.load %arg4[%c1_105, %c2_106, %c0_107, %c0_108] : memref<5x5x1x64xf32, #tpu.memory_space<vmem>>, vector<1x1x1x64xf32>
    %192 = vector.shape_cast %191 : vector<1x1x1x64xf32> to vector<1x64xf32>
    %193 = vector.broadcast %192 : vector<1x64xf32> to vector<8x64xf32>
    %194 = arith.mulf %190, %193 : vector<8x64xf32>
    %195 = vector.extract_strided_slice %179 {offsets = [0, 55], sizes = [8, 9], strides = [1, 1]} : vector<8x64xf32> to vector<8x9xf32>
    %196 = vector.extract_strided_slice %179 {offsets = [0, 0], sizes = [8, 55], strides = [1, 1]} : vector<8x64xf32> to vector<8x55xf32>
    %197 = tpu.concatenate %195, %196 in 1 : vector<8x9xf32>, vector<8x55xf32> -> vector<8x64xf32>
    %c1_109 = arith.constant 1 : index
    %c1_110 = arith.constant 1 : index
    %c0_111 = arith.constant 0 : index
    %c0_112 = arith.constant 0 : index
    %198 = vector.load %arg4[%c1_109, %c1_110, %c0_111, %c0_112] : memref<5x5x1x64xf32, #tpu.memory_space<vmem>>, vector<1x1x1x64xf32>
    %199 = vector.shape_cast %198 : vector<1x1x1x64xf32> to vector<1x64xf32>
    %200 = vector.broadcast %199 : vector<1x64xf32> to vector<8x64xf32>
    %201 = arith.mulf %197, %200 : vector<8x64xf32>
    %202 = tpu.concatenate %179, %187, %194, %201 in 0 : vector<8x64xf32>, vector<8x64xf32>, vector<8x64xf32>, vector<8x64xf32> -> vector<32x64xf32>
    %c0_113 = arith.constant 0 : index
    %c0_114 = arith.constant 0 : index
    %c0_115 = arith.constant 0 : index
    %c0_116 = arith.constant 0 : index
    %203 = vector.load %arg5[%c0_113, %c0_114, %c0_115, %c0_116] : memref<2x2x16x32xf32, #tpu.memory_space<vmem>>, vector<1x1x16x32xf32>
    %204 = vector.shape_cast %203 : vector<1x1x16x32xf32> to vector<16x32xf32>
    %cst_117 = arith.constant dense<0.000000e+00> : vector<16x64xf32>
    %205 = tpu.matmul %204, %202, %cst_117 {dimension_numbers = #tpu.dot_dimension_numbers<[1], [0], [0], [1], [0, 0, 1, 1], [], []>} : vector<16x32xf32>, vector<32x64xf32>, vector<16x64xf32> -> vector<16x64xf32>
    %206 = vector.broadcast %180 : vector<16x1xf32> to vector<16x64xf32>
    %207 = arith.addf %205, %206 : vector<16x64xf32>
    %cst_118 = arith.constant 0.000000e+00 : f32
    %208 = vector.broadcast %cst_118 : f32 to vector<16x64xf32>
    %209 = arith.maximumf %207, %208 : vector<16x64xf32>
    %210 = vector.extract_strided_slice %179 {offsets = [0, 1], sizes = [8, 63], strides = [1, 1]} : vector<8x64xf32> to vector<8x63xf32>
    %211 = vector.extract_strided_slice %179 {offsets = [0, 0], sizes = [8, 1], strides = [1, 1]} : vector<8x64xf32> to vector<8x1xf32>
    %212 = tpu.concatenate %210, %211 in 1 : vector<8x63xf32>, vector<8x1xf32> -> vector<8x64xf32>
    %c2_119 = arith.constant 2 : index
    %c3_120 = arith.constant 3 : index
    %c0_121 = arith.constant 0 : index
    %c0_122 = arith.constant 0 : index
    %213 = vector.load %arg4[%c2_119, %c3_120, %c0_121, %c0_122] : memref<5x5x1x64xf32, #tpu.memory_space<vmem>>, vector<1x1x1x64xf32>
    %214 = vector.shape_cast %213 : vector<1x1x1x64xf32> to vector<1x64xf32>
    %215 = vector.broadcast %214 : vector<1x64xf32> to vector<8x64xf32>
    %216 = arith.mulf %212, %215 : vector<8x64xf32>
    %217 = vector.extract_strided_slice %179 {offsets = [0, 57], sizes = [8, 7], strides = [1, 1]} : vector<8x64xf32> to vector<8x7xf32>
    %218 = vector.extract_strided_slice %179 {offsets = [0, 0], sizes = [8, 57], strides = [1, 1]} : vector<8x64xf32> to vector<8x57xf32>
    %219 = tpu.concatenate %217, %218 in 1 : vector<8x7xf32>, vector<8x57xf32> -> vector<8x64xf32>
    %c1_123 = arith.constant 1 : index
    %c3_124 = arith.constant 3 : index
    %c0_125 = arith.constant 0 : index
    %c0_126 = arith.constant 0 : index
    %220 = vector.load %arg4[%c1_123, %c3_124, %c0_125, %c0_126] : memref<5x5x1x64xf32, #tpu.memory_space<vmem>>, vector<1x1x1x64xf32>
    %221 = vector.shape_cast %220 : vector<1x1x1x64xf32> to vector<1x64xf32>
    %222 = vector.broadcast %221 : vector<1x64xf32> to vector<8x64xf32>
    %223 = arith.mulf %219, %222 : vector<8x64xf32>
    %224 = tpu.concatenate %179, %216, %194, %223 in 0 : vector<8x64xf32>, vector<8x64xf32>, vector<8x64xf32>, vector<8x64xf32> -> vector<32x64xf32>
    %c0_127 = arith.constant 0 : index
    %c1_128 = arith.constant 1 : index
    %c0_129 = arith.constant 0 : index
    %c0_130 = arith.constant 0 : index
    %225 = vector.load %arg5[%c0_127, %c1_128, %c0_129, %c0_130] : memref<2x2x16x32xf32, #tpu.memory_space<vmem>>, vector<1x1x16x32xf32>
    %226 = vector.shape_cast %225 : vector<1x1x16x32xf32> to vector<16x32xf32>
    %cst_131 = arith.constant dense<0.000000e+00> : vector<16x64xf32>
    %227 = tpu.matmul %226, %224, %cst_131 {dimension_numbers = #tpu.dot_dimension_numbers<[1], [0], [0], [1], [0, 0, 1, 1], [], []>} : vector<16x32xf32>, vector<32x64xf32>, vector<16x64xf32> -> vector<16x64xf32>
    %228 = vector.broadcast %180 : vector<16x1xf32> to vector<16x64xf32>
    %229 = arith.addf %227, %228 : vector<16x64xf32>
    %cst_132 = arith.constant 0.000000e+00 : f32
    %230 = vector.broadcast %cst_132 : f32 to vector<16x64xf32>
    %231 = arith.maximumf %229, %230 : vector<16x64xf32>
    %232 = vector.extract_strided_slice %179 {offsets = [0, 8], sizes = [8, 56], strides = [1, 1]} : vector<8x64xf32> to vector<8x56xf32>
    %233 = vector.extract_strided_slice %179 {offsets = [0, 0], sizes = [8, 8], strides = [1, 1]} : vector<8x64xf32> to vector<8x8xf32>
    %234 = tpu.concatenate %232, %233 in 1 : vector<8x56xf32>, vector<8x8xf32> -> vector<8x64xf32>
    %c3_133 = arith.constant 3 : index
    %c2_134 = arith.constant 2 : index
    %c0_135 = arith.constant 0 : index
    %c0_136 = arith.constant 0 : index
    %235 = vector.load %arg4[%c3_133, %c2_134, %c0_135, %c0_136] : memref<5x5x1x64xf32, #tpu.memory_space<vmem>>, vector<1x1x1x64xf32>
    %236 = vector.shape_cast %235 : vector<1x1x1x64xf32> to vector<1x64xf32>
    %237 = vector.broadcast %236 : vector<1x64xf32> to vector<8x64xf32>
    %238 = arith.mulf %234, %237 : vector<8x64xf32>
    %239 = vector.extract_strided_slice %179 {offsets = [0, 7], sizes = [8, 57], strides = [1, 1]} : vector<8x64xf32> to vector<8x57xf32>
    %240 = vector.extract_strided_slice %179 {offsets = [0, 0], sizes = [8, 7], strides = [1, 1]} : vector<8x64xf32> to vector<8x7xf32>
    %241 = tpu.concatenate %239, %240 in 1 : vector<8x57xf32>, vector<8x7xf32> -> vector<8x64xf32>
    %c3_137 = arith.constant 3 : index
    %c1_138 = arith.constant 1 : index
    %c0_139 = arith.constant 0 : index
    %c0_140 = arith.constant 0 : index
    %242 = vector.load %arg4[%c3_137, %c1_138, %c0_139, %c0_140] : memref<5x5x1x64xf32, #tpu.memory_space<vmem>>, vector<1x1x1x64xf32>
    %243 = vector.shape_cast %242 : vector<1x1x1x64xf32> to vector<1x64xf32>
    %244 = vector.broadcast %243 : vector<1x64xf32> to vector<8x64xf32>
    %245 = arith.mulf %241, %244 : vector<8x64xf32>
    %246 = tpu.concatenate %179, %187, %238, %245 in 0 : vector<8x64xf32>, vector<8x64xf32>, vector<8x64xf32>, vector<8x64xf32> -> vector<32x64xf32>
    %c1_141 = arith.constant 1 : index
    %c0_142 = arith.constant 0 : index
    %c0_143 = arith.constant 0 : index
    %c0_144 = arith.constant 0 : index
    %247 = vector.load %arg5[%c1_141, %c0_142, %c0_143, %c0_144] : memref<2x2x16x32xf32, #tpu.memory_space<vmem>>, vector<1x1x16x32xf32>
    %248 = vector.shape_cast %247 : vector<1x1x16x32xf32> to vector<16x32xf32>
    %cst_145 = arith.constant dense<0.000000e+00> : vector<16x64xf32>
    %249 = tpu.matmul %248, %246, %cst_145 {dimension_numbers = #tpu.dot_dimension_numbers<[1], [0], [0], [1], [0, 0, 1, 1], [], []>} : vector<16x32xf32>, vector<32x64xf32>, vector<16x64xf32> -> vector<16x64xf32>
    %250 = vector.broadcast %180 : vector<16x1xf32> to vector<16x64xf32>
    %251 = arith.addf %249, %250 : vector<16x64xf32>
    %cst_146 = arith.constant 0.000000e+00 : f32
    %252 = vector.broadcast %cst_146 : f32 to vector<16x64xf32>
    %253 = arith.maximumf %251, %252 : vector<16x64xf32>
    %254 = vector.extract_strided_slice %179 {offsets = [0, 9], sizes = [8, 55], strides = [1, 1]} : vector<8x64xf32> to vector<8x55xf32>
    %255 = vector.extract_strided_slice %179 {offsets = [0, 0], sizes = [8, 9], strides = [1, 1]} : vector<8x64xf32> to vector<8x9xf32>
    %256 = tpu.concatenate %254, %255 in 1 : vector<8x55xf32>, vector<8x9xf32> -> vector<8x64xf32>
    %c3_147 = arith.constant 3 : index
    %c3_148 = arith.constant 3 : index
    %c0_149 = arith.constant 0 : index
    %c0_150 = arith.constant 0 : index
    %257 = vector.load %arg4[%c3_147, %c3_148, %c0_149, %c0_150] : memref<5x5x1x64xf32, #tpu.memory_space<vmem>>, vector<1x1x1x64xf32>
    %258 = vector.shape_cast %257 : vector<1x1x1x64xf32> to vector<1x64xf32>
    %259 = vector.broadcast %258 : vector<1x64xf32> to vector<8x64xf32>
    %260 = arith.mulf %256, %259 : vector<8x64xf32>
    %261 = tpu.concatenate %179, %216, %238, %260 in 0 : vector<8x64xf32>, vector<8x64xf32>, vector<8x64xf32>, vector<8x64xf32> -> vector<32x64xf32>
    %c1_151 = arith.constant 1 : index
    %c1_152 = arith.constant 1 : index
    %c0_153 = arith.constant 0 : index
    %c0_154 = arith.constant 0 : index
    %262 = vector.load %arg5[%c1_151, %c1_152, %c0_153, %c0_154] : memref<2x2x16x32xf32, #tpu.memory_space<vmem>>, vector<1x1x16x32xf32>
    %263 = vector.shape_cast %262 : vector<1x1x16x32xf32> to vector<16x32xf32>
    %cst_155 = arith.constant dense<0.000000e+00> : vector<16x64xf32>
    %264 = tpu.matmul %263, %261, %cst_155 {dimension_numbers = #tpu.dot_dimension_numbers<[1], [0], [0], [1], [0, 0, 1, 1], [], []>} : vector<16x32xf32>, vector<32x64xf32>, vector<16x64xf32> -> vector<16x64xf32>
    %265 = vector.broadcast %180 : vector<16x1xf32> to vector<16x64xf32>
    %266 = arith.addf %264, %265 : vector<16x64xf32>
    %cst_156 = arith.constant 0.000000e+00 : f32
    %267 = vector.broadcast %cst_156 : f32 to vector<16x64xf32>
    %268 = arith.maximumf %266, %267 : vector<16x64xf32>
    %c0_157 = arith.constant 0 : index
    %c0_158 = arith.constant 0 : index
    %269 = vector.load %arg8[%c0_157, %c0_158] : memref<3x1xf32, #tpu.memory_space<vmem>>, vector<3x1xf32>
    %c0_159 = arith.constant 0 : index
    %c0_160 = arith.constant 0 : index
    %c0_161 = arith.constant 0 : index
    %c0_162 = arith.constant 0 : index
    %270 = vector.load %arg7[%c0_159, %c0_160, %c0_161, %c0_162] : memref<2x2x3x64xf32, #tpu.memory_space<vmem>>, vector<1x1x3x64xf32>
    %271 = vector.shape_cast %270 : vector<1x1x3x64xf32> to vector<3x64xf32>
    %272 = vector.extract_strided_slice %231 {offsets = [0, 63], sizes = [16, 1], strides = [1, 1]} : vector<16x64xf32> to vector<16x1xf32>
    %273 = vector.extract_strided_slice %231 {offsets = [0, 0], sizes = [16, 63], strides = [1, 1]} : vector<16x64xf32> to vector<16x63xf32>
    %274 = tpu.concatenate %272, %273 in 1 : vector<16x1xf32>, vector<16x63xf32> -> vector<16x64xf32>
    %c2_163 = arith.constant 2 : index
    %c1_164 = arith.constant 1 : index
    %c0_165 = arith.constant 0 : index
    %c0_166 = arith.constant 0 : index
    %275 = vector.load %arg4[%c2_163, %c1_164, %c0_165, %c0_166] : memref<5x5x1x64xf32, #tpu.memory_space<vmem>>, vector<1x1x1x64xf32>
    %276 = vector.shape_cast %275 : vector<1x1x1x64xf32> to vector<1x64xf32>
    %277 = vector.broadcast %276 : vector<1x64xf32> to vector<16x64xf32>
    %278 = arith.mulf %274, %277 : vector<16x64xf32>
    %279 = vector.extract_strided_slice %253 {offsets = [0, 56], sizes = [16, 8], strides = [1, 1]} : vector<16x64xf32> to vector<16x8xf32>
    %280 = vector.extract_strided_slice %253 {offsets = [0, 0], sizes = [16, 56], strides = [1, 1]} : vector<16x64xf32> to vector<16x56xf32>
    %281 = tpu.concatenate %279, %280 in 1 : vector<16x8xf32>, vector<16x56xf32> -> vector<16x64xf32>
    %c1_167 = arith.constant 1 : index
    %c2_168 = arith.constant 2 : index
    %c0_169 = arith.constant 0 : index
    %c0_170 = arith.constant 0 : index
    %282 = vector.load %arg4[%c1_167, %c2_168, %c0_169, %c0_170] : memref<5x5x1x64xf32, #tpu.memory_space<vmem>>, vector<1x1x1x64xf32>
    %283 = vector.shape_cast %282 : vector<1x1x1x64xf32> to vector<1x64xf32>
    %284 = vector.broadcast %283 : vector<1x64xf32> to vector<16x64xf32>
    %285 = arith.mulf %281, %284 : vector<16x64xf32>
    %286 = vector.extract_strided_slice %268 {offsets = [0, 55], sizes = [16, 9], strides = [1, 1]} : vector<16x64xf32> to vector<16x9xf32>
    %287 = vector.extract_strided_slice %268 {offsets = [0, 0], sizes = [16, 55], strides = [1, 1]} : vector<16x64xf32> to vector<16x55xf32>
    %288 = tpu.concatenate %286, %287 in 1 : vector<16x9xf32>, vector<16x55xf32> -> vector<16x64xf32>
    %c1_171 = arith.constant 1 : index
    %c1_172 = arith.constant 1 : index
    %c0_173 = arith.constant 0 : index
    %c0_174 = arith.constant 0 : index
    %289 = vector.load %arg4[%c1_171, %c1_172, %c0_173, %c0_174] : memref<5x5x1x64xf32, #tpu.memory_space<vmem>>, vector<1x1x1x64xf32>
    %290 = vector.shape_cast %289 : vector<1x1x1x64xf32> to vector<1x64xf32>
    %291 = vector.broadcast %290 : vector<1x64xf32> to vector<16x64xf32>
    %292 = arith.mulf %288, %291 : vector<16x64xf32>
    %293 = tpu.concatenate %209, %278, %285, %292 in 0 : vector<16x64xf32>, vector<16x64xf32>, vector<16x64xf32>, vector<16x64xf32> -> vector<64x64xf32>
    %cst_175 = arith.constant dense<0.000000e+00> : vector<3x64xf32>
    %294 = tpu.matmul %271, %293, %cst_175 {dimension_numbers = #tpu.dot_dimension_numbers<[1], [0], [0], [1], [0, 0, 1, 1], [], []>} : vector<3x64xf32>, vector<64x64xf32>, vector<3x64xf32> -> vector<3x64xf32>
    %295 = vector.broadcast %269 : vector<3x1xf32> to vector<3x64xf32>
    %296 = arith.addf %294, %295 : vector<3x64xf32>
    %297 = vector.extract_strided_slice %268 {offsets = [0, 56], sizes = [16, 8], strides = [1, 1]} : vector<16x64xf32> to vector<16x8xf32>
    %298 = vector.extract_strided_slice %268 {offsets = [0, 0], sizes = [16, 56], strides = [1, 1]} : vector<16x64xf32> to vector<16x56xf32>
    %299 = tpu.concatenate %297, %298 in 1 : vector<16x8xf32>, vector<16x56xf32> -> vector<16x64xf32>
    %c1_176 = arith.constant 1 : index
    %c2_177 = arith.constant 2 : index
    %c0_178 = arith.constant 0 : index
    %c0_179 = arith.constant 0 : index
    %300 = vector.load %arg4[%c1_176, %c2_177, %c0_178, %c0_179] : memref<5x5x1x64xf32, #tpu.memory_space<vmem>>, vector<1x1x1x64xf32>
    %301 = vector.shape_cast %300 : vector<1x1x1x64xf32> to vector<1x64xf32>
    %302 = vector.broadcast %301 : vector<1x64xf32> to vector<16x64xf32>
    %303 = arith.mulf %299, %302 : vector<16x64xf32>
    %304 = tpu.concatenate %231, %209, %303, %285 in 0 : vector<16x64xf32>, vector<16x64xf32>, vector<16x64xf32>, vector<16x64xf32> -> vector<64x64xf32>
    %cst_180 = arith.constant dense<0.000000e+00> : vector<3x64xf32>
    %305 = tpu.matmul %271, %304, %cst_180 {dimension_numbers = #tpu.dot_dimension_numbers<[1], [0], [0], [1], [0, 0, 1, 1], [], []>} : vector<3x64xf32>, vector<64x64xf32>, vector<3x64xf32> -> vector<3x64xf32>
    %306 = vector.broadcast %269 : vector<3x1xf32> to vector<3x64xf32>
    %307 = arith.addf %305, %306 : vector<3x64xf32>
    %308 = vector.extract_strided_slice %268 {offsets = [0, 63], sizes = [16, 1], strides = [1, 1]} : vector<16x64xf32> to vector<16x1xf32>
    %309 = vector.extract_strided_slice %268 {offsets = [0, 0], sizes = [16, 63], strides = [1, 1]} : vector<16x64xf32> to vector<16x63xf32>
    %310 = tpu.concatenate %308, %309 in 1 : vector<16x1xf32>, vector<16x63xf32> -> vector<16x64xf32>
    %c2_181 = arith.constant 2 : index
    %c1_182 = arith.constant 1 : index
    %c0_183 = arith.constant 0 : index
    %c0_184 = arith.constant 0 : index
    %311 = vector.load %arg4[%c2_181, %c1_182, %c0_183, %c0_184] : memref<5x5x1x64xf32, #tpu.memory_space<vmem>>, vector<1x1x1x64xf32>
    %312 = vector.shape_cast %311 : vector<1x1x1x64xf32> to vector<1x64xf32>
    %313 = vector.broadcast %312 : vector<1x64xf32> to vector<16x64xf32>
    %314 = arith.mulf %310, %313 : vector<16x64xf32>
    %315 = tpu.concatenate %253, %314, %209, %278 in 0 : vector<16x64xf32>, vector<16x64xf32>, vector<16x64xf32>, vector<16x64xf32> -> vector<64x64xf32>
    %cst_185 = arith.constant dense<0.000000e+00> : vector<3x64xf32>
    %316 = tpu.matmul %271, %315, %cst_185 {dimension_numbers = #tpu.dot_dimension_numbers<[1], [0], [0], [1], [0, 0, 1, 1], [], []>} : vector<3x64xf32>, vector<64x64xf32>, vector<3x64xf32> -> vector<3x64xf32>
    %317 = vector.broadcast %269 : vector<3x1xf32> to vector<3x64xf32>
    %318 = arith.addf %316, %317 : vector<3x64xf32>
    %319 = tpu.concatenate %268, %253, %231, %209 in 0 : vector<16x64xf32>, vector<16x64xf32>, vector<16x64xf32>, vector<16x64xf32> -> vector<64x64xf32>
    %cst_186 = arith.constant dense<0.000000e+00> : vector<3x64xf32>
    %320 = tpu.matmul %271, %319, %cst_186 {dimension_numbers = #tpu.dot_dimension_numbers<[1], [0], [0], [1], [0, 0, 1, 1], [], []>} : vector<3x64xf32>, vector<64x64xf32>, vector<3x64xf32> -> vector<3x64xf32>
    %321 = vector.broadcast %269 : vector<3x1xf32> to vector<3x64xf32>
    %322 = arith.addf %320, %321 : vector<3x64xf32>
    %c0_187 = arith.constant 0 : index
    %c1_188 = arith.constant 1 : index
    %c0_189 = arith.constant 0 : index
    %c0_190 = arith.constant 0 : index
    %323 = vector.load %arg7[%c0_187, %c1_188, %c0_189, %c0_190] : memref<2x2x3x64xf32, #tpu.memory_space<vmem>>, vector<1x1x3x64xf32>
    %324 = vector.shape_cast %323 : vector<1x1x3x64xf32> to vector<3x64xf32>
    %325 = tpu.concatenate %209, %231, %285, %303 in 0 : vector<16x64xf32>, vector<16x64xf32>, vector<16x64xf32>, vector<16x64xf32> -> vector<64x64xf32>
    %cst_191 = arith.constant dense<0.000000e+00> : vector<3x64xf32>
    %326 = tpu.matmul %324, %325, %cst_191 {dimension_numbers = #tpu.dot_dimension_numbers<[1], [0], [0], [1], [0, 0, 1, 1], [], []>} : vector<3x64xf32>, vector<64x64xf32>, vector<3x64xf32> -> vector<3x64xf32>
    %327 = vector.broadcast %269 : vector<3x1xf32> to vector<3x64xf32>
    %328 = arith.addf %326, %327 : vector<3x64xf32>
    %329 = vector.extract_strided_slice %209 {offsets = [0, 1], sizes = [16, 63], strides = [1, 1]} : vector<16x64xf32> to vector<16x63xf32>
    %330 = vector.extract_strided_slice %209 {offsets = [0, 0], sizes = [16, 1], strides = [1, 1]} : vector<16x64xf32> to vector<16x1xf32>
    %331 = tpu.concatenate %329, %330 in 1 : vector<16x63xf32>, vector<16x1xf32> -> vector<16x64xf32>
    %c2_192 = arith.constant 2 : index
    %c3_193 = arith.constant 3 : index
    %c0_194 = arith.constant 0 : index
    %c0_195 = arith.constant 0 : index
    %332 = vector.load %arg4[%c2_192, %c3_193, %c0_194, %c0_195] : memref<5x5x1x64xf32, #tpu.memory_space<vmem>>, vector<1x1x1x64xf32>
    %333 = vector.shape_cast %332 : vector<1x1x1x64xf32> to vector<1x64xf32>
    %334 = vector.broadcast %333 : vector<1x64xf32> to vector<16x64xf32>
    %335 = arith.mulf %331, %334 : vector<16x64xf32>
    %336 = vector.extract_strided_slice %253 {offsets = [0, 57], sizes = [16, 7], strides = [1, 1]} : vector<16x64xf32> to vector<16x7xf32>
    %337 = vector.extract_strided_slice %253 {offsets = [0, 0], sizes = [16, 57], strides = [1, 1]} : vector<16x64xf32> to vector<16x57xf32>
    %338 = tpu.concatenate %336, %337 in 1 : vector<16x7xf32>, vector<16x57xf32> -> vector<16x64xf32>
    %c1_196 = arith.constant 1 : index
    %c3_197 = arith.constant 3 : index
    %c0_198 = arith.constant 0 : index
    %c0_199 = arith.constant 0 : index
    %339 = vector.load %arg4[%c1_196, %c3_197, %c0_198, %c0_199] : memref<5x5x1x64xf32, #tpu.memory_space<vmem>>, vector<1x1x1x64xf32>
    %340 = vector.shape_cast %339 : vector<1x1x1x64xf32> to vector<1x64xf32>
    %341 = vector.broadcast %340 : vector<1x64xf32> to vector<16x64xf32>
    %342 = arith.mulf %338, %341 : vector<16x64xf32>
    %343 = tpu.concatenate %231, %335, %303, %342 in 0 : vector<16x64xf32>, vector<16x64xf32>, vector<16x64xf32>, vector<16x64xf32> -> vector<64x64xf32>
    %cst_200 = arith.constant dense<0.000000e+00> : vector<3x64xf32>
    %344 = tpu.matmul %324, %343, %cst_200 {dimension_numbers = #tpu.dot_dimension_numbers<[1], [0], [0], [1], [0, 0, 1, 1], [], []>} : vector<3x64xf32>, vector<64x64xf32>, vector<3x64xf32> -> vector<3x64xf32>
    %345 = vector.broadcast %269 : vector<3x1xf32> to vector<3x64xf32>
    %346 = arith.addf %344, %345 : vector<3x64xf32>
    %347 = tpu.concatenate %253, %268, %209, %231 in 0 : vector<16x64xf32>, vector<16x64xf32>, vector<16x64xf32>, vector<16x64xf32> -> vector<64x64xf32>
    %cst_201 = arith.constant dense<0.000000e+00> : vector<3x64xf32>
    %348 = tpu.matmul %324, %347, %cst_201 {dimension_numbers = #tpu.dot_dimension_numbers<[1], [0], [0], [1], [0, 0, 1, 1], [], []>} : vector<3x64xf32>, vector<64x64xf32>, vector<3x64xf32> -> vector<3x64xf32>
    %349 = vector.broadcast %269 : vector<3x1xf32> to vector<3x64xf32>
    %350 = arith.addf %348, %349 : vector<3x64xf32>
    %351 = vector.extract_strided_slice %253 {offsets = [0, 1], sizes = [16, 63], strides = [1, 1]} : vector<16x64xf32> to vector<16x63xf32>
    %352 = vector.extract_strided_slice %253 {offsets = [0, 0], sizes = [16, 1], strides = [1, 1]} : vector<16x64xf32> to vector<16x1xf32>
    %353 = tpu.concatenate %351, %352 in 1 : vector<16x63xf32>, vector<16x1xf32> -> vector<16x64xf32>
    %c2_202 = arith.constant 2 : index
    %c3_203 = arith.constant 3 : index
    %c0_204 = arith.constant 0 : index
    %c0_205 = arith.constant 0 : index
    %354 = vector.load %arg4[%c2_202, %c3_203, %c0_204, %c0_205] : memref<5x5x1x64xf32, #tpu.memory_space<vmem>>, vector<1x1x1x64xf32>
    %355 = vector.shape_cast %354 : vector<1x1x1x64xf32> to vector<1x64xf32>
    %356 = vector.broadcast %355 : vector<1x64xf32> to vector<16x64xf32>
    %357 = arith.mulf %353, %356 : vector<16x64xf32>
    %358 = tpu.concatenate %268, %357, %231, %335 in 0 : vector<16x64xf32>, vector<16x64xf32>, vector<16x64xf32>, vector<16x64xf32> -> vector<64x64xf32>
    %cst_206 = arith.constant dense<0.000000e+00> : vector<3x64xf32>
    %359 = tpu.matmul %324, %358, %cst_206 {dimension_numbers = #tpu.dot_dimension_numbers<[1], [0], [0], [1], [0, 0, 1, 1], [], []>} : vector<3x64xf32>, vector<64x64xf32>, vector<3x64xf32> -> vector<3x64xf32>
    %360 = vector.broadcast %269 : vector<3x1xf32> to vector<3x64xf32>
    %361 = arith.addf %359, %360 : vector<3x64xf32>
    %c1_207 = arith.constant 1 : index
    %c0_208 = arith.constant 0 : index
    %c0_209 = arith.constant 0 : index
    %c0_210 = arith.constant 0 : index
    %362 = vector.load %arg7[%c1_207, %c0_208, %c0_209, %c0_210] : memref<2x2x3x64xf32, #tpu.memory_space<vmem>>, vector<1x1x3x64xf32>
    %363 = vector.shape_cast %362 : vector<1x1x3x64xf32> to vector<3x64xf32>
    %364 = tpu.concatenate %209, %278, %253, %314 in 0 : vector<16x64xf32>, vector<16x64xf32>, vector<16x64xf32>, vector<16x64xf32> -> vector<64x64xf32>
    %cst_211 = arith.constant dense<0.000000e+00> : vector<3x64xf32>
    %365 = tpu.matmul %363, %364, %cst_211 {dimension_numbers = #tpu.dot_dimension_numbers<[1], [0], [0], [1], [0, 0, 1, 1], [], []>} : vector<3x64xf32>, vector<64x64xf32>, vector<3x64xf32> -> vector<3x64xf32>
    %366 = vector.broadcast %269 : vector<3x1xf32> to vector<3x64xf32>
    %367 = arith.addf %365, %366 : vector<3x64xf32>
    %368 = tpu.concatenate %231, %209, %268, %253 in 0 : vector<16x64xf32>, vector<16x64xf32>, vector<16x64xf32>, vector<16x64xf32> -> vector<64x64xf32>
    %cst_212 = arith.constant dense<0.000000e+00> : vector<3x64xf32>
    %369 = tpu.matmul %363, %368, %cst_212 {dimension_numbers = #tpu.dot_dimension_numbers<[1], [0], [0], [1], [0, 0, 1, 1], [], []>} : vector<3x64xf32>, vector<64x64xf32>, vector<3x64xf32> -> vector<3x64xf32>
    %370 = vector.broadcast %269 : vector<3x1xf32> to vector<3x64xf32>
    %371 = arith.addf %369, %370 : vector<3x64xf32>
    %372 = vector.extract_strided_slice %209 {offsets = [0, 8], sizes = [16, 56], strides = [1, 1]} : vector<16x64xf32> to vector<16x56xf32>
    %373 = vector.extract_strided_slice %209 {offsets = [0, 0], sizes = [16, 8], strides = [1, 1]} : vector<16x64xf32> to vector<16x8xf32>
    %374 = tpu.concatenate %372, %373 in 1 : vector<16x56xf32>, vector<16x8xf32> -> vector<16x64xf32>
    %c3_213 = arith.constant 3 : index
    %c2_214 = arith.constant 2 : index
    %c0_215 = arith.constant 0 : index
    %c0_216 = arith.constant 0 : index
    %375 = vector.load %arg4[%c3_213, %c2_214, %c0_215, %c0_216] : memref<5x5x1x64xf32, #tpu.memory_space<vmem>>, vector<1x1x1x64xf32>
    %376 = vector.shape_cast %375 : vector<1x1x1x64xf32> to vector<1x64xf32>
    %377 = vector.broadcast %376 : vector<1x64xf32> to vector<16x64xf32>
    %378 = arith.mulf %374, %377 : vector<16x64xf32>
    %379 = vector.extract_strided_slice %231 {offsets = [0, 7], sizes = [16, 57], strides = [1, 1]} : vector<16x64xf32> to vector<16x57xf32>
    %380 = vector.extract_strided_slice %231 {offsets = [0, 0], sizes = [16, 7], strides = [1, 1]} : vector<16x64xf32> to vector<16x7xf32>
    %381 = tpu.concatenate %379, %380 in 1 : vector<16x57xf32>, vector<16x7xf32> -> vector<16x64xf32>
    %c3_217 = arith.constant 3 : index
    %c1_218 = arith.constant 1 : index
    %c0_219 = arith.constant 0 : index
    %c0_220 = arith.constant 0 : index
    %382 = vector.load %arg4[%c3_217, %c1_218, %c0_219, %c0_220] : memref<5x5x1x64xf32, #tpu.memory_space<vmem>>, vector<1x1x1x64xf32>
    %383 = vector.shape_cast %382 : vector<1x1x1x64xf32> to vector<1x64xf32>
    %384 = vector.broadcast %383 : vector<1x64xf32> to vector<16x64xf32>
    %385 = arith.mulf %381, %384 : vector<16x64xf32>
    %386 = tpu.concatenate %253, %314, %378, %385 in 0 : vector<16x64xf32>, vector<16x64xf32>, vector<16x64xf32>, vector<16x64xf32> -> vector<64x64xf32>
    %cst_221 = arith.constant dense<0.000000e+00> : vector<3x64xf32>
    %387 = tpu.matmul %363, %386, %cst_221 {dimension_numbers = #tpu.dot_dimension_numbers<[1], [0], [0], [1], [0, 0, 1, 1], [], []>} : vector<3x64xf32>, vector<64x64xf32>, vector<3x64xf32> -> vector<3x64xf32>
    %388 = vector.broadcast %269 : vector<3x1xf32> to vector<3x64xf32>
    %389 = arith.addf %387, %388 : vector<3x64xf32>
    %390 = vector.extract_strided_slice %231 {offsets = [0, 8], sizes = [16, 56], strides = [1, 1]} : vector<16x64xf32> to vector<16x56xf32>
    %391 = vector.extract_strided_slice %231 {offsets = [0, 0], sizes = [16, 8], strides = [1, 1]} : vector<16x64xf32> to vector<16x8xf32>
    %392 = tpu.concatenate %390, %391 in 1 : vector<16x56xf32>, vector<16x8xf32> -> vector<16x64xf32>
    %c3_222 = arith.constant 3 : index
    %c2_223 = arith.constant 2 : index
    %c0_224 = arith.constant 0 : index
    %c0_225 = arith.constant 0 : index
    %393 = vector.load %arg4[%c3_222, %c2_223, %c0_224, %c0_225] : memref<5x5x1x64xf32, #tpu.memory_space<vmem>>, vector<1x1x1x64xf32>
    %394 = vector.shape_cast %393 : vector<1x1x1x64xf32> to vector<1x64xf32>
    %395 = vector.broadcast %394 : vector<1x64xf32> to vector<16x64xf32>
    %396 = arith.mulf %392, %395 : vector<16x64xf32>
    %397 = tpu.concatenate %268, %253, %396, %378 in 0 : vector<16x64xf32>, vector<16x64xf32>, vector<16x64xf32>, vector<16x64xf32> -> vector<64x64xf32>
    %cst_226 = arith.constant dense<0.000000e+00> : vector<3x64xf32>
    %398 = tpu.matmul %363, %397, %cst_226 {dimension_numbers = #tpu.dot_dimension_numbers<[1], [0], [0], [1], [0, 0, 1, 1], [], []>} : vector<3x64xf32>, vector<64x64xf32>, vector<3x64xf32> -> vector<3x64xf32>
    %399 = vector.broadcast %269 : vector<3x1xf32> to vector<3x64xf32>
    %400 = arith.addf %398, %399 : vector<3x64xf32>
    %c1_227 = arith.constant 1 : index
    %c1_228 = arith.constant 1 : index
    %c0_229 = arith.constant 0 : index
    %c0_230 = arith.constant 0 : index
    %401 = vector.load %arg7[%c1_227, %c1_228, %c0_229, %c0_230] : memref<2x2x3x64xf32, #tpu.memory_space<vmem>>, vector<1x1x3x64xf32>
    %402 = vector.shape_cast %401 : vector<1x1x3x64xf32> to vector<3x64xf32>
    %403 = tpu.concatenate %209, %231, %253, %268 in 0 : vector<16x64xf32>, vector<16x64xf32>, vector<16x64xf32>, vector<16x64xf32> -> vector<64x64xf32>
    %cst_231 = arith.constant dense<0.000000e+00> : vector<3x64xf32>
    %404 = tpu.matmul %402, %403, %cst_231 {dimension_numbers = #tpu.dot_dimension_numbers<[1], [0], [0], [1], [0, 0, 1, 1], [], []>} : vector<3x64xf32>, vector<64x64xf32>, vector<3x64xf32> -> vector<3x64xf32>
    %405 = vector.broadcast %269 : vector<3x1xf32> to vector<3x64xf32>
    %406 = arith.addf %404, %405 : vector<3x64xf32>
    %407 = tpu.concatenate %231, %335, %268, %357 in 0 : vector<16x64xf32>, vector<16x64xf32>, vector<16x64xf32>, vector<16x64xf32> -> vector<64x64xf32>
    %cst_232 = arith.constant dense<0.000000e+00> : vector<3x64xf32>
    %408 = tpu.matmul %402, %407, %cst_232 {dimension_numbers = #tpu.dot_dimension_numbers<[1], [0], [0], [1], [0, 0, 1, 1], [], []>} : vector<3x64xf32>, vector<64x64xf32>, vector<3x64xf32> -> vector<3x64xf32>
    %409 = vector.broadcast %269 : vector<3x1xf32> to vector<3x64xf32>
    %410 = arith.addf %408, %409 : vector<3x64xf32>
    %411 = tpu.concatenate %253, %268, %378, %396 in 0 : vector<16x64xf32>, vector<16x64xf32>, vector<16x64xf32>, vector<16x64xf32> -> vector<64x64xf32>
    %cst_233 = arith.constant dense<0.000000e+00> : vector<3x64xf32>
    %412 = tpu.matmul %402, %411, %cst_233 {dimension_numbers = #tpu.dot_dimension_numbers<[1], [0], [0], [1], [0, 0, 1, 1], [], []>} : vector<3x64xf32>, vector<64x64xf32>, vector<3x64xf32> -> vector<3x64xf32>
    %413 = vector.broadcast %269 : vector<3x1xf32> to vector<3x64xf32>
    %414 = arith.addf %412, %413 : vector<3x64xf32>
    %415 = vector.extract_strided_slice %209 {offsets = [0, 9], sizes = [16, 55], strides = [1, 1]} : vector<16x64xf32> to vector<16x55xf32>
    %416 = vector.extract_strided_slice %209 {offsets = [0, 0], sizes = [16, 9], strides = [1, 1]} : vector<16x64xf32> to vector<16x9xf32>
    %417 = tpu.concatenate %415, %416 in 1 : vector<16x55xf32>, vector<16x9xf32> -> vector<16x64xf32>
    %c3_234 = arith.constant 3 : index
    %c3_235 = arith.constant 3 : index
    %c0_236 = arith.constant 0 : index
    %c0_237 = arith.constant 0 : index
    %418 = vector.load %arg4[%c3_234, %c3_235, %c0_236, %c0_237] : memref<5x5x1x64xf32, #tpu.memory_space<vmem>>, vector<1x1x1x64xf32>
    %419 = vector.shape_cast %418 : vector<1x1x1x64xf32> to vector<1x64xf32>
    %420 = vector.broadcast %419 : vector<1x64xf32> to vector<16x64xf32>
    %421 = arith.mulf %417, %420 : vector<16x64xf32>
    %422 = tpu.concatenate %268, %357, %396, %421 in 0 : vector<16x64xf32>, vector<16x64xf32>, vector<16x64xf32>, vector<16x64xf32> -> vector<64x64xf32>
    %cst_238 = arith.constant dense<0.000000e+00> : vector<3x64xf32>
    %423 = tpu.matmul %402, %422, %cst_238 {dimension_numbers = #tpu.dot_dimension_numbers<[1], [0], [0], [1], [0, 0, 1, 1], [], []>} : vector<3x64xf32>, vector<64x64xf32>, vector<3x64xf32> -> vector<3x64xf32>
    %424 = vector.broadcast %269 : vector<3x1xf32> to vector<3x64xf32>
    %425 = arith.addf %423, %424 : vector<3x64xf32>
    %426 = tpu.concatenate %296, %328, %307, %346, %367, %406, %371, %410, %318, %350, %322, %361, %389, %414, %400, %425 in 1 : vector<3x64xf32>, vector<3x64xf32>, vector<3x64xf32>, vector<3x64xf32>, vector<3x64xf32>, vector<3x64xf32>, vector<3x64xf32>, vector<3x64xf32>, vector<3x64xf32>, vector<3x64xf32>, vector<3x64xf32>, vector<3x64xf32>, vector<3x64xf32>, vector<3x64xf32>, vector<3x64xf32>, vector<3x64xf32> -> vector<3x1024xf32>
    %c0_239 = arith.constant 0 : index
    %c0_240 = arith.constant 0 : index
    %c0_241 = arith.constant 0 : index
    %427 = vector.load %arg9[%c0_239, %c0_240, %c0_241] : memref<1x3x1024xf32, #tpu.memory_space<vmem>>, vector<1x3x1024xf32>
    %428 = vector.shape_cast %427 : vector<1x3x1024xf32> to vector<3x1024xf32>
    %429 = vector.shape_cast %426 : vector<3x1024xf32> to vector<1x3x1024xf32>
    tpu.vector_store %arg9[%c0_239, %c0_240, %c0_241], %429 {strides = array<i32>} : memref<1x3x1024xf32, #tpu.memory_space<vmem>>, vector<1x3x1024xf32>,
    return
  }
  func.func @transform_0(%arg0: i32) -> (i32, i32, i32) {
    %c0_i32 = arith.constant 0 : i32
    %c0_i32_0 = arith.constant 0 : i32
    %c0_i32_1 = arith.constant 0 : i32
    return %arg0, %c0_i32, %c0_i32_0 : i32, i32, i32
  }
  func.func @transform_1(%arg0: i32) -> (i32, i32) {
    %c0_i32 = arith.constant 0 : i32
    %c0_i32_0 = arith.constant 0 : i32
    %c0_i32_1 = arith.constant 0 : i32
    return %c0_i32, %c0_i32_0 : i32, i32
  }
  func.func @transform_2(%arg0: i32) -> (i32, i32) {
    %c0_i32 = arith.constant 0 : i32
    %c0_i32_0 = arith.constant 0 : i32
    %c0_i32_1 = arith.constant 0 : i32
    return %c0_i32, %c0_i32_0 : i32, i32
  }
  func.func @transform_3(%arg0: i32) -> (i32, i32, i32, i32) {
    %c0_i32 = arith.constant 0 : i32
    %c0_i32_0 = arith.constant 0 : i32
    %c0_i32_1 = arith.constant 0 : i32
    %c0_i32_2 = arith.constant 0 : i32
    %c0_i32_3 = arith.constant 0 : i32
    return %c0_i32, %c0_i32_0, %c0_i32_1, %c0_i32_2 : i32, i32, i32, i32
  }
  func.func @transform_4(%arg0: i32) -> (i32, i32, i32, i32) {
    %c0_i32 = arith.constant 0 : i32
    %c0_i32_0 = arith.constant 0 : i32
    %c0_i32_1 = arith.constant 0 : i32
    %c0_i32_2 = arith.constant 0 : i32
    %c0_i32_3 = arith.constant 0 : i32
    return %c0_i32, %c0_i32_0, %c0_i32_1, %c0_i32_2 : i32, i32, i32, i32
  }
  func.func @transform_5(%arg0: i32) -> (i32, i32) {
    %c0_i32 = arith.constant 0 : i32
    %c0_i32_0 = arith.constant 0 : i32
    %c0_i32_1 = arith.constant 0 : i32
    return %c0_i32, %c0_i32_0 : i32, i32
  }
  func.func @transform_6(%arg0: i32) -> (i32, i32, i32, i32) {
    %c0_i32 = arith.constant 0 : i32
    %c0_i32_0 = arith.constant 0 : i32
    %c0_i32_1 = arith.constant 0 : i32
    %c0_i32_2 = arith.constant 0 : i32
    %c0_i32_3 = arith.constant 0 : i32
    return %c0_i32, %c0_i32_0, %c0_i32_1, %c0_i32_2 : i32, i32, i32, i32
  }
  func.func @transform_7(%arg0: i32) -> (i32, i32) {
    %c0_i32 = arith.constant 0 : i32
    %c0_i32_0 = arith.constant 0 : i32
    %c0_i32_1 = arith.constant 0 : i32
    return %c0_i32, %c0_i32_0 : i32, i32
  }
  func.func @transform_8(%arg0: i32) -> (i32, i32, i32) {
    %c0_i32 = arith.constant 0 : i32
    %c0_i32_0 = arith.constant 0 : i32
    %c0_i32_1 = arith.constant 0 : i32
    return %arg0, %c0_i32, %c0_i32_0 : i32, i32, i32
  }
}

</mosaic_0001>

<bundles_post_ra>
// kernel: image_renderer_decoder_forward.1
= control target key start
LH: loop header
LB: loop body
LE: loop exit
PB: predicated region body
PF: predicated region fallthrough
CT: control target
= control target key end

     0   :  { %s4046_s27 = smov 0   ;;  %s4792_s0 = inlined_call_operand.vmem [shape: f32[2,16,64], index: 0, kind: input, shape index: {}]   ;;  %s4793_s1 = inlined_call_operand.vmem [shape: f32[8,400], index: 1, kind: input, shape index: {}]   ;;  %s4794_s2 = inlined_call_operand.vmem [shape: f32[8,1], index: 2, kind: input, shape index: {}]   ;;  %s4795_s3 = inlined_call_operand.vmem [shape: f32[5,5,1,64], index: 3, kind: input, shape index: {}]   ;;  %s4796_s4 = inlined_call_operand.vmem [shape: f32[2,2,16,32], index: 4, kind: input, shape index: {}]   ;;  %s4797_s5 = inlined_call_operand.vmem [shape: f32[16,1], index: 5, kind: input, shape index: {}]   ;;  %s4798_s6 = inlined_call_operand.vmem [shape: f32[2,2,3,64], index: 6, kind: input, shape index: {}]   ;;  %s4799_s7 = inlined_call_operand.vmem [shape: f32[3,1], index: 7, kind: input, shape index: {}]   ;;  %s4800_s8 = inlined_call_operand.vmem [shape: f32[2,3,1024], index: 8, kind: output, shape index: {}]  }
   0x1 LB: > { %s2945_s28 = sadd.s32 4294967295, %s3946_s27   ;;  %p2949_p0 = scmp.ge.s32.totalorder %s3946_s27, 1  ;;  %s3946_s27 = sphi %s4046_s27, %s18_s27  }
   0x2   : > { %p262_p1 = scmp.lt.s32.totalorder %s3946_s27, 3 }
   0x4   : > { %p263_p2 = pnand %p2949_p0, %p262_p1 }
   0x5   : > { %p296_p3 = scmp.lt.s32.totalorder (!%p263_p2), %s2945_s28, 1  ;;  %s3948_s11 = smov (!%p263_p2), 7   ;;  %v3951_v2 = vmov (!%p263_p2), 0.0|0.0   ;;  %vm521_vm0 = vcmask (!%p263_p2), 56320   ;;  %v4153_v6 = vld [vmem:[%s4795_s3 + $0x8] ss:$0 sm:$0xff] (!%p263_p2) }
   0x6   : > { %266 = sbr.rel (%p263_p2) target bundleno = 1501 (0x5dd), region = 52  ;;  %s3949_s12 = smov (!%p263_p2), 71   ;;  %3622 = vmatprep.subr.bf16.mxu1 (!%p263_p2), %v3951_v2  ;;  %vm322_vm1 = vcmask (!%p263_p2), 146432   ;;  %v2954_v15 = vld [vmem:[%s4795_s3] ss:$0 sm:$0xff] (!%p263_p2)  ;;  %vm696_vm2 = vcmask (!%p263_p2), 465920  }
   0x7   : > { %s3950_s13 = smov (!%p263_p2), 82   ;;  %s3952_s14 = smov (!%p263_p2), 18   ;;  %v4172_v25 = vld [vmem:[%s4795_s3 + $0x10] ss:$0 sm:$0xff] (!%p263_p2)  ;;  %vm546_vm3 = vcmask (!%p263_p2), 48128   ;;  %vm346_vm4 = vcmask (!%p263_p2), 138240  }
   0x8   : > { %s4809_s15 = smov (!%p263_p2), 121   ;;  %s4803_s16 = smov (!%p263_p2), 57   ;;  %v2972_v35 = vld [vmem:[%s4795_s3 + $0x9] ss:$0 sm:$0xff] (!%p263_p2)  ;;  %v2956_v45 = vld [vmem:[%s4795_s3 + $0x1] ss:$0 sm:$0xff] (!%p263_p2) }
   0x9   : > { %s3955_s17 = smov (!%p263_p2), 70   ;;  %s3956_s18 = smov (!%p263_p2), 6   ;;  %vm721_vm5 = vcmask (!%p263_p2), 457728   ;;  %v4204_v55 = vld [vmem:[%s4795_s3 + $0x11] ss:$0 sm:$0xff] (!%p263_p2)  ;;  %vm571_vm6 = vcmask (!%p263_p2), 15360  }
   0xa   : > { %s3957_s19 = smov (!%p263_p2), 81   ;;  %s3958_s20 = smov (!%p263_p2), 17   ;;  %vm371_vm7 = vcmask (!%p263_p2), 130048   ;;  %vm746_vm8 = vcmask (!%p263_p2), 449536   ;;  %vm596_vm9 = vcmask (!%p263_p2), 7168   ;;  %vm396_vm10 = vcmask (!%p263_p2), 121856  }
   0xb   : > { %s3959_s21 = smov (!%p263_p2), 120   ;;  %s4805_s22 = smov (!%p263_p2), 56   ;;  %vm771_vm11 = vcmask (!%p263_p2), 441344   ;;  %vm421_vm12 = vcmask (!%p263_p2), 113664   ;;  %vm796_vm13 = vcmask (!%p263_p2), 408576   ;;  %vm621_vm14 = vcmask (!%p263_p2), 515072  }
   0xc   : > { %s3961_s23 = smov (!%p263_p2), 66   ;;  %s3962_s24 = smov (!%p263_p2), 2   ;;  %vm446_vm15 = vcmask (!%p263_p2), 80896  }
   0xd   : > { %s4817_s28 = smov (!%p296_p3, %s2945_s28), 1  ;;  %s3963_s25 = smov 80  }
   0xe   : > { %s3037_s29 = sshll.u32 %s4817_s28, 4  ;;  %s3964_s26 = smov 16  }
   0xf   : > { %s300_s10 = scalar_lea.vmem %s4792_s0, %s3037_s29  ;;  %s4807_s29 = smov 119  }
  0x10   : > { %v4060_v0 = vld [vmem:[%s300_s10] sm:$0xff]  ;;  %v4066_v1 = vld [vmem:[%s300_s10 + $0x8] sm:$0xff]  ;;  %s4801_s30 = smov 55   ;;  %s3967_s9 = smov 65  }
  0x11   : > { %515 = vrot.lane.b32.xlu1 %v4060_v0, %s3948_s11  ;;  %509 = vrot.lane.b32.xlu0 %v4060_v0, %s3949_s12  ;;  %s3968_s10 = smov 1  }
  0x15   : > { %517 = vrot.lane.b32.xlu1 %v4066_v1, %s3948_s11  ;;  %511 = vrot.lane.b32.xlu0 %v4066_v1, %s3949_s12 }
  0x19   : > { %312 = vrot.lane.b32.xlu1 %v4066_v1, %s3950_s13  ;;  %310 = vrot.lane.b32.xlu0 %v4060_v0, %s3950_s13  ;;  %s3969_s13 = smov 79  }
  0x1d   : > { %318 = vrot.lane.b32.xlu1 %v4066_v1, %s3952_s14  ;;  %316 = vrot.lane.b32.xlu0 %v4060_v0, %s3952_s14  ;;  %s3970_s14 = smov 15  }
  0x21   : > { %686 = vrot.lane.b32.xlu1 %v4066_v1, %s4809_s15  ;;  %684 = vrot.lane.b32.xlu0 %v4060_v0, %s4809_s15 }
  0x25   : > { %692 = vrot.lane.b32.xlu1 %v4066_v1, %s4803_s16  ;;  %690 = vrot.lane.b32.xlu0 %v4060_v0, %s4803_s16  ;;  %s3995_s16 = smov 110  }
  0x29   : > { %536 = vrot.lane.b32.xlu1 %v4066_v1, %s3955_s17  ;;  %534 = vrot.lane.b32.xlu0 %v4060_v0, %s3955_s17  ;;  %s3971_s17 = smov 118  }
  0x2d   : > { %542 = vrot.lane.b32.xlu1 %v4066_v1, %s3956_s18  ;;  %540 = vrot.lane.b32.xlu0 %v4060_v0, %s3956_s18  ;;  %s3972_s18 = smov 54  }
  0x31   : > { %336 = vrot.lane.b32.xlu1 %v4066_v1, %s3957_s19  ;;  %334 = vrot.lane.b32.xlu0 %v4060_v0, %s3957_s19  ;;  %s3973_s19 = smov 78  }
  0x35   : > { %342 = vrot.lane.b32.xlu1 %v4066_v1, %s3958_s20  ;;  %340 = vrot.lane.b32.xlu0 %v4060_v0, %s3958_s20  ;;  %s3974_s20 = smov 14  }
  0x39   : > { %711 = vrot.lane.b32.xlu1 %v4066_v1, %s3959_s21  ;;  %709 = vrot.lane.b32.xlu0 %v4060_v0, %s3959_s21 }
  0x3d   : > { %717 = vrot.lane.b32.xlu1 %v4066_v1, %s4805_s22  ;;  %715 = vrot.lane.b32.xlu0 %v4060_v0, %s4805_s22  ;;  %s3997_s22 = smov 46  }
  0x41   : > { %561 = vrot.lane.b32.xlu1 %v4066_v1, %s3961_s23  ;;  %559 = vrot.lane.b32.xlu0 %v4060_v0, %s3961_s23  ;;  %s3975_s23 = smov 114  }
  0x45   : > { %567 = vrot.lane.b32.xlu1 %v4066_v1, %s3962_s24  ;;  %565 = vrot.lane.b32.xlu0 %v4060_v0, %s3962_s24  ;;  %s3976_s24 = smov 50  }
  0x49   : > { %361 = vrot.lane.b32.xlu1 %v4066_v1, %s3963_s25  ;;  %359 = vrot.lane.b32.xlu0 %v4060_v0, %s3963_s25  ;;  %s3977_s25 = smov 127  }
  0x4d   : > { %367 = vrot.lane.b32.xlu1 %v4066_v1, %s3964_s26  ;;  %365 = vrot.lane.b32.xlu0 %v4060_v0, %s3964_s26  ;;  %s3978_s26 = smov 63  }
  0x51   : > { %736 = vrot.lane.b32.xlu1 %v4066_v1, %s4807_s29  ;;  %734 = vrot.lane.b32.xlu0 %v4060_v0, %s4807_s29 }
  0x55   : > { %742 = vrot.lane.b32.xlu1 %v4066_v1, %s4801_s30  ;;  %740 = vrot.lane.b32.xlu0 %v4060_v0, %s4801_s30 }
  0x59   : > { %586 = vrot.lane.b32.xlu1 %v4066_v1, %s3967_s9  ;;  %584 = vrot.lane.b32.xlu0 %v4060_v0, %s3967_s9 }
  0x5d   : > { %592 = vrot.lane.b32.xlu1 %v4066_v1, %s3968_s10  ;;  %590 = vrot.lane.b32.xlu0 %v4060_v0, %s3968_s10 }
  0x61   : > { %386 = vrot.lane.b32.xlu1 %v4066_v1, %s3969_s13  ;;  %384 = vrot.lane.b32.xlu0 %v4060_v0, %s3969_s13  ;;  %s3989_s13 = smov 122  }
  0x65   : > { %392 = vrot.lane.b32.xlu1 %v4066_v1, %s3970_s14  ;;  %390 = vrot.lane.b32.xlu0 %v4060_v0, %s3970_s14  ;;  %s3990_s14 = smov 58  }
  0x69   : > { %761 = vrot.lane.b32.xlu1 %v4066_v1, %s3971_s17  ;;  %759 = vrot.lane.b32.xlu0 %v4060_v0, %s3971_s17  ;;  %s3979_s17 = smov 74  }
  0x6d   : > { %767 = vrot.lane.b32.xlu1 %v4066_v1, %s3972_s18  ;;  %765 = vrot.lane.b32.xlu0 %v4060_v0, %s3972_s18  ;;  %s3980_s18 = smov 10  }
  0x71   : > { %411 = vrot.lane.b32.xlu1 %v4066_v1, %s3973_s19  ;;  %409 = vrot.lane.b32.xlu0 %v4060_v0, %s3973_s19  ;;  %s3991_s19 = smov 72  }
  0x75   : > { %417 = vrot.lane.b32.xlu1 %v4066_v1, %s3974_s20  ;;  %415 = vrot.lane.b32.xlu0 %v4060_v0, %s3974_s20  ;;  %s3992_s20 = smov 8  }
  0x79   : > { %786 = vrot.lane.b32.xlu1 %v4066_v1, %s3975_s23  ;;  %784 = vrot.lane.b32.xlu0 %v4060_v0, %s3975_s23  ;;  %s3981_s23 = smov 113  }
  0x7d   : > { %792 = vrot.lane.b32.xlu1 %v4066_v1, %s3976_s24  ;;  %790 = vrot.lane.b32.xlu0 %v4060_v0, %s3976_s24  ;;  %s3982_s24 = smov 49  }
  0x81   : > { %611 = vrot.lane.b32.xlu1 %v4066_v1, %s3977_s25  ;;  %609 = vrot.lane.b32.xlu0 %v4060_v0, %s3977_s25 }
  0x83   : > { %v516_v3 = vpop.permute.xlu1 %515  ;;  %v510_v4 = vpop.permute.xlu0 %509 }
  0x84   : > { %v522_v5 = vsel %vm521_vm0, %v510_v4, %v516_v3  ;;  %v2974_v4 = vld [vmem:[%s4795_s3 + $0xa] ss:$0 sm:$0xff] }
  0x85   : > { %617 = vrot.lane.b32.xlu1 %v4066_v1, %s3978_s26  ;;  %615 = vrot.lane.b32.xlu0 %v4060_v0, %s3978_s26  ;;  %v532_v10 = vmul.f32 %v4153_v6, %v522_v5 }
  0x87   : > { %v518_v7 = vpop.permute.xlu1 %517  ;;  %v512_v8 = vpop.permute.xlu0 %511 }
  0x88   : > { %v523_v9 = vsel %vm521_vm0, %v512_v8, %v518_v7 }
  0x89   : > { %436 = vrot.lane.b32.xlu1 %v4066_v1, %s3979_s17  ;;  %434 = vrot.lane.b32.xlu0 %v4060_v0, %s3979_s17  ;;  %v533_v11 = vmul.f32 %v4153_v6, %v523_v9  ;;  %s3983_s17 = smov 126  }
  0x8b   : > { %v313_v12 = vpop.permute.xlu1 %312  ;;  %v311_v13 = vpop.permute.xlu0 %310  ;;  %v3590_v14 = vpack.c.bf16 %v533_v11, %v532_v10 }
  0x8d   : > { %442 = vrot.lane.b32.xlu1 %v4066_v1, %s3980_s18  ;;  %440 = vrot.lane.b32.xlu0 %v4060_v0, %s3980_s18  ;;  %s3984_s18 = smov 62  }
  0x8e   : > { %3591 = vmatprep.subr.bf16.mxu0 %v3590_v14 }
  0x8f   : > { %v319_v16 = vpop.permute.xlu1 %318  ;;  %v317_v17 = vpop.permute.xlu0 %316 }
  0x90   : > { %v324_v18 = vsel %vm322_vm1, %v313_v12, %v319_v16  ;;  %v323_v19 = vsel %vm322_vm1, %v311_v13, %v317_v17  ;;  %vm821_vm1 = vcmask 400384  }
  0x91   : > { %v333_v20 = vmul.f32 %v2954_v15, %v324_v18  ;;  %v332_v21 = vmul.f32 %v2954_v15, %v323_v19  ;;  %811 = vrot.lane.b32.xlu1 %v4066_v1, %s3981_s23  ;;  %809 = vrot.lane.b32.xlu0 %v4060_v0, %s3981_s23  ;;  %s3985_s23 = smov 73   ;;  %v2958_v15 = vld [vmem:[%s4795_s3 + $0x2] ss:$0 sm:$0xff] }
  0x93   : > { %v687_v22 = vpop.permute.xlu1 %686  ;;  %v685_v23 = vpop.permute.xlu0 %684  ;;  %v3592_v24 = vpack.c.bf16 %v333_v20, %v332_v21 }
  0x95   : > { %817 = vrot.lane.b32.xlu1 %v4066_v1, %s3982_s24  ;;  %815 = vrot.lane.b32.xlu0 %v4060_v0, %s3982_s24  ;;  %s3986_s24 = smov 9  }
  0x96   : > { %3593 = vmatpush3.bf16.msra.mxu0 %v3592_v24 }
  0x97   : > { %v693_v26 = vpop.permute.xlu1 %692  ;;  %v691_v27 = vpop.permute.xlu0 %690 }
  0x98   : > { %v698_v28 = vsel %vm696_vm2, %v687_v22, %v693_v26  ;;  %v697_v29 = vsel %vm696_vm2, %v685_v23, %v691_v27  ;;  %v911_v22 = vld [vmem:[%s4793_s1 + $0x8] sm:$0xff]  ;;  %v913_v27 = vld [vmem:[%s4793_s1 + $0x18] sm:$0xff] }
  0x99   : > { %v708_v30 = vmul.f32 %v4172_v25, %v698_v28  ;;  %v707_v31 = vmul.f32 %v4172_v25, %v697_v29  ;;  %636 = vrot.lane.b32.xlu1 %v4066_v1, %s3983_s17  ;;  %634 = vrot.lane.b32.xlu0 %v4060_v0, %s3983_s17  ;;  %s3987_s17 = smov 112   ;;  %v4244_v28 = vld [vmem:[%s4795_s3 + $0x12] ss:$0 sm:$0xff] }
  0x9a   : > { %986 = vmatprep.mubr.f32.mxu0 %v911_v22  ;;  %3001 = vmatprep.mubr.msk.f32.mxu1 %vm371_vm7, %v913_v27 }
  0x9b   : > { %v537_v32 = vpop.permute.xlu1 %536  ;;  %v535_v33 = vpop.permute.xlu0 %534  ;;  %v3623_v34 = vpack.c.bf16 %v708_v30, %v707_v31 }
  0x9d   : > { %642 = vrot.lane.b32.xlu1 %v4066_v1, %s3984_s18  ;;  %640 = vrot.lane.b32.xlu0 %v4060_v0, %s3984_s18  ;;  %s3988_s18 = smov 48  }
  0x9e   : > { %3624 = vmatpush1.bf16.msra.mxu1 %v3623_v34 }
  0x9f   : > { %v543_v36 = vpop.permute.xlu1 %542  ;;  %v541_v37 = vpop.permute.xlu0 %540  ;;  %3625 = vmatprep.subr.bf16.mxu1 %v3951_v2 }
  0xa0   : > { %v548_v38 = vsel %vm546_vm3, %v537_v32, %v543_v36  ;;  %v547_v39 = vsel %vm546_vm3, %v535_v33, %v541_v37  ;;  %vm646_vm3 = vcmask 506880  }
  0xa1   : > { %v558_v40 = vmul.f32 %v2972_v35, %v548_v38  ;;  %v557_v41 = vmul.f32 %v2972_v35, %v547_v39  ;;  %461 = vrot.lane.b32.xlu1 %v4066_v1, %s3985_s23  ;;  %459 = vrot.lane.b32.xlu0 %v4060_v0, %s3985_s23  ;;  %v3996_v35 = vmov 0   ;;  %v4258_v39 = vld [vmem:[%s4795_s3 + $0xb] ss:$0 sm:$0xff] }
  0xa2   : > { %3934 = vset.pattern.permute.xlu0 %v3996_v35  ;;  %3935 = vset.pattern.permute.xlu1 %v3996_v35 }
  0xa3   : > { %v337_v42 = vpop.permute.xlu1 %336  ;;  %v335_v43 = vpop.permute.xlu0 %334  ;;  %v3594_v44 = vpack.c.bf16 %v558_v40, %v557_v41  ;;  %v909_v40 = vld [vmem:[%s4794_s2] sm:$0xff] }
  0xa5   : > { %467 = vrot.lane.b32.xlu1 %v4066_v1, %s3986_s24  ;;  %465 = vrot.lane.b32.xlu0 %v4060_v0, %s3986_s24 }
  0xa6   : > { %3595 = vmatprep.subr.bf16.mxu0 %v3594_v44 }
  0xa7   : > { %v343_v46 = vpop.permute.xlu1 %342  ;;  %v341_v47 = vpop.permute.xlu0 %340 }
  0xa8   : > { %v348_v48 = vsel %vm346_vm4, %v337_v42, %v343_v46  ;;  %v347_v49 = vsel %vm346_vm4, %v335_v43, %v341_v47  ;;  %vm471_vm4 = vcmask 72704  }
  0xa9   : > { %v358_v50 = vmul.f32 %v2956_v45, %v348_v48  ;;  %v357_v51 = vmul.f32 %v2956_v45, %v347_v49  ;;  %836 = vrot.lane.b32.xlu1 %v4066_v1, %s3987_s17  ;;  %834 = vrot.lane.b32.xlu0 %v4060_v0, %s3987_s17  ;;  %s3993_s17 = smov 111  }
  0xab   : > { %v712_v52 = vpop.permute.xlu1 %711  ;;  %v710_v53 = vpop.permute.xlu0 %709  ;;  %v3596_v54 = vpack.c.bf16 %v358_v50, %v357_v51  ;;  %v2960_v50 = vld [vmem:[%s4795_s3 + $0x3] ss:$0 sm:$0xff] }
  0xad   : > { %842 = vrot.lane.b32.xlu1 %v4066_v1, %s3988_s18  ;;  %840 = vrot.lane.b32.xlu0 %v4060_v0, %s3988_s18  ;;  %s4812_s18 = smov 57  }
  0xae   : > { %3597 = vmatpush3.bf16.msra.mxu0 %v3596_v54 }
  0xaf   : > { %v718_v56 = vpop.permute.xlu1 %717  ;;  %v716_v57 = vpop.permute.xlu0 %715 }
  0xb0   : > { %v723_v58 = vsel %vm721_vm5, %v712_v52, %v718_v56  ;;  %v722_v59 = vsel %vm721_vm5, %v710_v53, %v716_v57 }
  0xb1   : > { %v733_v60 = vmul.f32 %v4204_v55, %v723_v58  ;;  %v732_v61 = vmul.f32 %v4204_v55, %v722_v59  ;;  %661 = vrot.lane.b32.xlu1 %v4066_v1, %s3989_s13  ;;  %659 = vrot.lane.b32.xlu0 %v4060_v0, %s3989_s13  ;;  %s3994_s13 = smov 47   ;;  %v3606_v58 = vpack.c.bf16 %v4066_v1, %v4060_v0 }
  0xb3   : > { %v562_v62 = vpop.permute.xlu1 %561  ;;  %v560_v63 = vpop.permute.xlu0 %559  ;;  %v3626_v3 = vpack.c.bf16 %v733_v60, %v732_v61 }
  0xb5   : > { %667 = vrot.lane.b32.xlu1 %v4066_v1, %s3990_s14  ;;  %665 = vrot.lane.b32.xlu0 %v4060_v0, %s3990_s14 }
  0xb6   : > { %3627 = vmatpush1.bf16.msra.mxu1 %v3626_v3 }
  0xb7   : > { %v568_v5 = vpop.permute.xlu1 %567  ;;  %v566_v7 = vpop.permute.xlu0 %565  ;;  %3628 = vmatprep.subr.bf16.mxu1 %v3951_v2 }
  0xb8   : > { %v573_v8 = vsel %vm571_vm6, %v562_v62, %v568_v5  ;;  %v572_v9 = vsel %vm571_vm6, %v560_v63, %v566_v7  ;;  %v2990_v62 = vld [vmem:[%s4795_s3 + $0x13] ss:$0 sm:$0xff]  ;;  %vm846_vm6 = vcmask 392192  }
  0xb9   : > { %v583_v10 = vmul.f32 %v2974_v4, %v573_v8  ;;  %v582_v11 = vmul.f32 %v2974_v4, %v572_v9  ;;  %486 = vrot.lane.b32.xlu1 %v4066_v1, %s3991_s19  ;;  %484 = vrot.lane.b32.xlu0 %v4060_v0, %s3991_s19 }
  0xbb   : > { %v362_v12 = vpop.permute.xlu1 %361  ;;  %v360_v13 = vpop.permute.xlu0 %359  ;;  %v3598_v14 = vpack.c.bf16 %v583_v10, %v582_v11 }
  0xbd   : > { %492 = vrot.lane.b32.xlu1 %v4066_v1, %s3992_s20  ;;  %490 = vrot.lane.b32.xlu0 %v4060_v0, %s3992_s20 }
  0xbe   : > { %3599 = vmatprep.subr.bf16.mxu0 %v3598_v14 }
  0xbf   : > { %v368_v16 = vpop.permute.xlu1 %367  ;;  %v366_v17 = vpop.permute.xlu0 %365 }
  0xc0   : > { %v373_v18 = vsel %vm371_vm7, %v362_v12, %v368_v16  ;;  %v372_v19 = vsel %vm371_vm7, %v360_v13, %v366_v17  ;;  %vm671_vm7 = vcmask 474112  }
  0xc1   : > { %v383_v20 = vmul.f32 %v2958_v15, %v373_v18  ;;  %v382_v21 = vmul.f32 %v2958_v15, %v372_v19  ;;  %861 = vrot.lane.b32.xlu1 %v4066_v1, %s3993_s17  ;;  %859 = vrot.lane.b32.xlu0 %v4060_v0, %s3993_s17 }
  0xc3   : > { %v737_v23 = vpop.permute.xlu1 %736  ;;  %v735_v24 = vpop.permute.xlu0 %734  ;;  %v3600_v26 = vpack.c.bf16 %v383_v20, %v382_v21  ;;  %v2992_v20 = vld [vmem:[%s4795_s3 + $0x14] ss:$0 sm:$0xff] }
  0xc5   : > { %867 = vrot.lane.b32.xlu1 %v4066_v1, %s3994_s13  ;;  %865 = vrot.lane.b32.xlu0 %v4060_v0, %s3994_s13  ;;  %s4813_s13 = smov 55  }
  0xc6   : > { %3601 = vmatpush3.bf16.msra.mxu0 %v3600_v26 }
  0xc7   : > { %v743_v29 = vpop.permute.xlu1 %742  ;;  %v741_v30 = vpop.permute.xlu0 %740 }
  0xc8   : > { %v748_v31 = vsel %vm746_vm8, %v737_v23, %v743_v29  ;;  %v747_v32 = vsel %vm746_vm8, %v735_v24, %v741_v30 }
  0xc9   : > { %v758_v33 = vmul.f32 %v4244_v28, %v748_v31  ;;  %v757_v34 = vmul.f32 %v4244_v28, %v747_v32  ;;  %886 = vrot.lane.b32.xlu1 %v4066_v1, %s3995_s16  ;;  %884 = vrot.lane.b32.xlu0 %v4060_v0, %s3995_s16  ;;  %v4286_v32 = vld [vmem:[%s4795_s3 + $0xd] ss:$0 sm:$0xff]  ;;  %s4811_s16 = smov 56  }
  0xcb   : > { %v587_v36 = vpop.permute.xlu1 %586  ;;  %v585_v37 = vpop.permute.xlu0 %584  ;;  %v3629_v38 = vpack.c.bf16 %v758_v33, %v757_v34 }
  0xcd   : > { %892 = vrot.lane.b32.xlu1 %v4066_v1, %s3997_s22  ;;  %890 = vrot.lane.b32.xlu0 %v4060_v0, %s3997_s22  ;;  %v2962_v0 = vld [vmem:[%s4795_s3 + $0x4] ss:$0 sm:$0xff] }
  0xce   : > { %3630 = vmatpush1.bf16.msra.mxu1 %v3629_v38 }
  0xcf   : > { %v593_v41 = vpop.permute.xlu1 %592  ;;  %v591_v42 = vpop.permute.xlu0 %590  ;;  %3631 = vmatprep.subr.bf16.mxu1 %v3951_v2 }
  0xd0   : > { %v598_v43 = vsel %vm596_vm9, %v587_v36, %v593_v41  ;;  %v597_v44 = vsel %vm596_vm9, %v585_v37, %v591_v42 }
  0xd1   : > { %v608_v45 = vmul.f32 %v4258_v39, %v598_v43  ;;  %v607_v46 = vmul.f32 %v4258_v39, %v597_v44  ;;  %916 = vperm.xlu0 %3934, %v909_v40   ;;  %v2964_v43 = vld [vmem:[%s4795_s3 + $0x5] ss:$0 sm:$0xff] }
  0xd3   : > { %v387_v47 = vpop.permute.xlu1 %386  ;;  %v385_v48 = vpop.permute.xlu0 %384  ;;  %v3602_v49 = vpack.c.bf16 %v608_v45, %v607_v46 }
  0xd5   : > { %3603 = vmatprep.subr.bf16.mxu0 %v3602_v49 }
  0xd7   : > { %v393_v51 = vpop.permute.xlu1 %392  ;;  %v391_v52 = vpop.permute.xlu0 %390 }
  0xd8   : > { %v398_v53 = vsel %vm396_vm10, %v387_v47, %v393_v51  ;;  %v397_v54 = vsel %vm396_vm10, %v385_v48, %v391_v52  ;;  %vm496_vm10 = vcmask 64512  }
  0xd9   : > { %v408_v56 = vmul.f32 %v2960_v50, %v398_v53  ;;  %v407_v57 = vmul.f32 %v2960_v50, %v397_v54  ;;  %v2994_v53 = vld [vmem:[%s4795_s3 + $0x15] ss:$0 sm:$0xff] }
  0xdb   : > { %v762_v59 = vpop.permute.xlu1 %761  ;;  %v760_v60 = vpop.permute.xlu0 %759  ;;  %v3604_v61 = vpack.c.bf16 %v408_v56, %v407_v57 }
  0xdd   : > { %3605 = vmatpush3.bf16.msra.mxu0 %v3604_v61 }
  0xde   : > { %3607 = vmatprep.subr.bf16.mxu0 %v3606_v58 }
  0xdf   : > { %v768_v63 = vpop.permute.xlu1 %767  ;;  %v766_v3 = vpop.permute.xlu0 %765 }
  0xe0   : > { %v773_v4 = vsel %vm771_vm11, %v762_v59, %v768_v63  ;;  %v772_v5 = vsel %vm771_vm11, %v760_v60, %v766_v3  ;;  %v2980_v3 = vld [vmem:[%s4795_s3 + $0xe] ss:$0 sm:$0xff]  ;;  %vm871_vm11 = vcmask 384000  }
  0xe1   : > { %v783_v7 = vmul.f32 %v2990_v62, %v773_v4  ;;  %v782_v8 = vmul.f32 %v2990_v62, %v772_v5 }
  0xe3   : > { %v412_v9 = vpop.permute.xlu1 %411  ;;  %v410_v10 = vpop.permute.xlu0 %409  ;;  %v3632_v11 = vpack.c.bf16 %v783_v7, %v782_v8 }
  0xe5   : > { %3633 = vmatpush1.bf16.msra.mxu1 %v3632_v11 }
  0xe6   : > { %3634 = vmatprep.subr.bf16.mxu1 %v3951_v2 }
  0xe7   : > { %v418_v1 = vpop.permute.xlu1 %417  ;;  %v416_v12 = vpop.permute.xlu0 %415 }
  0xe8   : > { %v423_v13 = vsel %vm421_vm12, %v412_v9, %v418_v1  ;;  %v422_v14 = vsel %vm421_vm12, %v410_v10, %v416_v12  ;;  %v4306_v12 = vld [vmem:[%s4795_s3 + $0x6] ss:$0 sm:$0xff]  ;;  %vm896_vm12 = vcmask 375808  }
  0xe9   : > { %v433_v15 = vmul.f32 %v2962_v0, %v423_v13  ;;  %v432_v16 = vmul.f32 %v2962_v0, %v422_v14 }
  0xeb   : > { %v787_v17 = vpop.permute.xlu1 %786  ;;  %v785_v18 = vpop.permute.xlu0 %784  ;;  %v3608_v19 = vpack.c.bf16 %v433_v15, %v432_v16 }
  0xed   : > { %3609 = vmatpush3.bf16.msra.mxu0 %v3608_v19 }
  0xef   : > { %v793_v21 = vpop.permute.xlu1 %792  ;;  %v791_v22 = vpop.permute.xlu0 %790 }
  0xf0   : > { %v798_v23 = vsel %vm796_vm13, %v787_v17, %v793_v21  ;;  %v797_v24 = vsel %vm796_vm13, %v785_v18, %v791_v22  ;;  %v2996_v22 = vld [vmem:[%s4795_s3 + $0x16] ss:$0 sm:$0xff]  ;;  %vm1102_vm13 = vcmask 261120  }
  0xf1   : > { %v808_v26 = vmul.f32 %v2992_v20, %v798_v23  ;;  %v807_v27 = vmul.f32 %v2992_v20, %v797_v24 }
  0xf3   : > { %v612_v29 = vpop.permute.xlu1 %611  ;;  %v610_v30 = vpop.permute.xlu0 %609  ;;  %v3635_v31 = vpack.c.bf16 %v808_v26, %v807_v27 }
  0xf5   : > { %3636 = vmatpush1.bf16.msra.mxu1 %v3635_v31 }
  0xf6   : > { %3637 = vmatprep.subr.bf16.mxu1 %v3951_v2 }
  0xf7   : > { %v618_v33 = vpop.permute.xlu1 %617  ;;  %v616_v34 = vpop.permute.xlu0 %615 }
  0xf8   : > { %v623_v35 = vsel %vm621_vm14, %v612_v29, %v618_v33  ;;  %v622_v36 = vsel %vm621_vm14, %v610_v30, %v616_v34 }
  0xf9   : > { %v633_v37 = vmul.f32 %v4286_v32, %v623_v35  ;;  %v632_v38 = vmul.f32 %v4286_v32, %v622_v36  ;;  %v2982_v35 = vld [vmem:[%s4795_s3 + $0xf] ss:$0 sm:$0xff] }
  0xfb   : > { %v437_v40 = vpop.permute.xlu1 %436  ;;  %v435_v41 = vpop.permute.xlu0 %434  ;;  %v3610_v42 = vpack.c.bf16 %v633_v37, %v632_v38 }
  0xfd   : > { %3611 = vmatprep.subr.bf16.mxu0 %v3610_v42 }
  0xff   : > { %v443_v44 = vpop.permute.xlu1 %442  ;;  %v441_v45 = vpop.permute.xlu0 %440 }
 0x100   : > { %v448_v46 = vsel %vm446_vm15, %v437_v40, %v443_v44  ;;  %v447_v47 = vsel %vm446_vm15, %v435_v41, %v441_v45  ;;  %vm3998_vm15 = vmmov 0  }
 0x101   : > { %v458_v48 = vmul.f32 %v2964_v43, %v448_v46  ;;  %v457_v49 = vmul.f32 %v2964_v43, %v447_v47  ;;  %v4322_v46 = vld [vmem:[%s4795_s3 + $0x7] ss:$0 sm:$0xff] }
 0x103   : > { %v812_v50 = vpop.permute.xlu1 %811  ;;  %v810_v51 = vpop.permute.xlu0 %809  ;;  %v3612_v52 = vpack.c.bf16 %v458_v48, %v457_v49 }
 0x105   : > { %3613 = vmatpush3.bf16.msra.mxu0 %v3612_v52 }
 0x107   : > { %v818_v54 = vpop.permute.xlu1 %817  ;;  %v816_v56 = vpop.permute.xlu0 %815 }
 0x108   : > { %v823_v57 = vsel %vm821_vm1, %v812_v50, %v818_v54  ;;  %v822_v58 = vsel %vm821_vm1, %v810_v51, %v816_v56  ;;  %vm1545_vm1 = vcmask 523264  }
 0x109   : > { %v833_v59 = vmul.f32 %v2994_v53, %v823_v57  ;;  %v832_v60 = vmul.f32 %v2994_v53, %v822_v58  ;;  %v910_v57 = vld [vmem:[%s4793_s1] sm:$0xff]  ;;  %v2998_v58 = vld [vmem:[%s4795_s3 + $0x17] ss:$0 sm:$0xff] }
 0x10b   : > { %v637_v61 = vpop.permute.xlu1 %636  ;;  %v635_v62 = vpop.permute.xlu0 %634  ;;  %v3638_v63 = vpack.c.bf16 %v833_v59, %v832_v60 }
 0x10d   : > { %3639 = vmatpush1.bf16.msra.mxu1 %v3638_v63 }
 0x10e   : > { %3640 = vmatprep.subr.bf16.mxu1 %v3951_v2 }
 0x10f   : > { %v643_v4 = vpop.permute.xlu1 %642  ;;  %v641_v5 = vpop.permute.xlu0 %640 }
 0x110   : > { %v648_v7 = vsel %vm646_vm3, %v637_v61, %v643_v4  ;;  %v647_v8 = vsel %vm646_vm3, %v635_v62, %v641_v5 }
 0x111   : > { %v658_v9 = vmul.f32 %v2980_v3, %v648_v7  ;;  %v657_v10 = vmul.f32 %v2980_v3, %v647_v8  ;;  %v3000_v8 = vld [vmem:[%s4795_s3 + $0x18] ss:$0 sm:$0xff] }
 0x113   : > { %v462_v11 = vpop.permute.xlu1 %461  ;;  %v460_v0 = vpop.permute.xlu0 %459  ;;  %v3614_v1 = vpack.c.bf16 %v658_v9, %v657_v10 }
 0x115   : > { %3615 = vmatprep.subr.bf16.mxu0 %v3614_v1 }
 0x117   : > { %v468_v13 = vpop.permute.xlu1 %467  ;;  %v466_v14 = vpop.permute.xlu0 %465 }
 0x118   : > { %v473_v15 = vsel %vm471_vm4, %v462_v11, %v468_v13  ;;  %v472_v16 = vsel %vm471_vm4, %v460_v0, %v466_v14 }
 0x119   : > { %v483_v17 = vmul.f32 %v4306_v12, %v473_v15  ;;  %v482_v18 = vmul.f32 %v4306_v12, %v472_v16  ;;  %v912_v15 = vld [vmem:[%s4793_s1 + $0x10] sm:$0xff] }
 0x11b   : > { %v837_v19 = vpop.permute.xlu1 %836  ;;  %v835_v20 = vpop.permute.xlu0 %834  ;;  %v3616_v21 = vpack.c.bf16 %v483_v17, %v482_v18 }
 0x11d   : > { %3617 = vmatpush3.bf16.msra.mxu0 %v3616_v21 }
 0x11f   : > { %v843_v23 = vpop.permute.xlu1 %842  ;;  %v841_v24 = vpop.permute.xlu0 %840 }
 0x120   : > { %v848_v26 = vsel %vm846_vm6, %v837_v19, %v843_v23  ;;  %v847_v27 = vsel %vm846_vm6, %v835_v20, %v841_v24 }
 0x121   : > { %v858_v29 = vmul.f32 %v2996_v22, %v848_v26  ;;  %v857_v30 = vmul.f32 %v2996_v22, %v847_v27  ;;  %v1090_v26 = vld [vmem:[%s4796_s4] sm:$0xff]  ;;  %v3004_v27 = vld [vmem:[%s4796_s4 + $0x10] sm:$0xff] }
 0x123   : > { %v662_v31 = vpop.permute.xlu1 %661  ;;  %v660_v33 = vpop.permute.xlu0 %659  ;;  %v3641_v34 = vpack.c.bf16 %v858_v29, %v857_v30  ;;  %v1063_v29 = vld [vmem:[%s4797_s5] sm:$0xff]  ;;  %v1064_v30 = vld [vmem:[%s4797_s5 + $0x8] sm:$0xff] }
 0x125   : > { %3642 = vmatpush1.bf16.msra.mxu1 %v3641_v34 }
 0x126   : > { %3643 = vmatprep.subr.bf16.mxu1 %v3951_v2 }
 0x127   : > { %v668_v36 = vpop.permute.xlu1 %667  ;;  %v666_v37 = vpop.permute.xlu0 %665 }
 0x128   : > { %v673_v38 = vsel %vm671_vm7, %v662_v31, %v668_v36  ;;  %v672_v40 = vsel %vm671_vm7, %v660_v33, %v666_v37 }
 0x129   : > { %v683_v41 = vmul.f32 %v2982_v35, %v673_v38  ;;  %v682_v42 = vmul.f32 %v2982_v35, %v672_v40 }
 0x12b   : > { %v487_v43 = vpop.permute.xlu1 %486  ;;  %v485_v44 = vpop.permute.xlu0 %484  ;;  %v3618_v45 = vpack.c.bf16 %v683_v41, %v682_v42 }
 0x12d   : > { %3619 = vmatprep.subr.bf16.mxu0 %v3618_v45 }
 0x12f   : > { %v493_v47 = vpop.permute.xlu1 %492  ;;  %v491_v48 = vpop.permute.xlu0 %490 }
 0x130   : > { %v498_v49 = vsel %vm496_vm10, %v487_v43, %v493_v47  ;;  %v497_v50 = vsel %vm496_vm10, %v485_v44, %v491_v48 }
 0x131   : > { %v508_v51 = vmul.f32 %v4322_v46, %v498_v49  ;;  %v507_v52 = vmul.f32 %v4322_v46, %v497_v50 }
 0x133   : > { %v862_v53 = vpop.permute.xlu1 %861  ;;  %v860_v54 = vpop.permute.xlu0 %859  ;;  %v3620_v56 = vpack.c.bf16 %v508_v51, %v507_v52 }
 0x135   : > { %3621 = vmatpush3.bf16.msra.mxu0 %v3620_v56 }
 0x137   : > { %v868_v59 = vpop.permute.xlu1 %867  ;;  %v866_v60 = vpop.permute.xlu0 %865 }
 0x138   : > { %v873_v61 = vsel %vm871_vm11, %v862_v53, %v868_v59  ;;  %v872_v62 = vsel %vm871_vm11, %v860_v54, %v866_v60  ;;  %987 = vmatmul.mubr.f32.vlgmr.msra.gmra.mrb[0].mxu0 %v910_v57  ;;  %v1091_v59 = vld [vmem:[%s4796_s4 + $0x8] sm:$0xff] }
 0x139   : > { %v883_v63 = vmul.f32 %v2998_v58, %v873_v61  ;;  %v882_v3 = vmul.f32 %v2998_v58, %v872_v62  ;;  %3250 = vmatprep.mubr.msk.f32.mxu0 %vm1102_vm13, %v1090_v26  ;;  %v3008_v62 = vld [vmem:[%s4796_s4 + $0x20] sm:$0xff] }
 0x13b   : > { %v887_v4 = vpop.permute.xlu1 %886  ;;  %v885_v5 = vpop.permute.xlu0 %884  ;;  %v3644_v7 = vpack.c.bf16 %v883_v63, %v882_v3 }
 0x13d   : > { %3645 = vmatpush1.bf16.msra.mxu1 %v3644_v7 }
 0x13e   : > { %3646 = vmatprep.subr.bf16.mxu1 %v3951_v2 }
 0x13f   : > { %v893_v9 = vpop.permute.xlu1 %892  ;;  %v891_v10 = vpop.permute.xlu0 %890 }
 0x140   : > { %v898_v11 = vsel %vm896_vm12, %v887_v4, %v893_v9  ;;  %v897_v0 = vsel %vm896_vm12, %v885_v5, %v891_v10  ;;  %v3012_v5 = vld [vmem:[%s4796_s4 + $0x30] sm:$0xff] }
 0x141   : > { %v908_v1 = vmul.f32 %v3000_v8, %v898_v11  ;;  %v907_v13 = vmul.f32 %v3000_v8, %v897_v0 }
 0x143   : > { %v3647_v14 = vpack.c.bf16 %v908_v1, %v907_v13 }
 0x145   : > { %3648 = vmatpush1.bf16.msra.mxu1 %v3647_v14 }
 0x148   : > { %1057 = vmatmul.mubr.f32.vlgmr.msra.gmra.mrb[0].mxu1 %v912_v15 }
 0x149   : > { %3261 = vmatprep.mubr.msk.f32.mxu1 %vm1102_vm13, %v3004_v27 }
 0x150   : > { %v917_v19 = vpop.permute.xlu0 %916 }
 0x20b   : > { %v3071_v16 = vpop.f32.mrb[0].mxu0 }
 0x20c   : > { %v3072_v17 = vpop.f32.mrb[1].mxu0 }
 0x20d   : > { %v3073_v18 = vadd.f32 %v3072_v17, %v3071_v16 }
 0x20f   : > { %v989_v20 = vadd.f32 %v3073_v18, %v917_v19 }
 0x21b   : > { %v1058_v21 = vpop.f32.mrb[0].mxu1 }
 0x21c   : > { %v1059_v22 = vadd.f32 %v1058_v21, %v989_v20  ;;  %v1060_v23 = vpop.f32.mrb[1].mxu1 }
 0x21e   : > { %v1062_v24 = vmax.f32 %v1059_v22, 0.0 }
 0x220   : > { %1186 = vrot.lane.b32.xlu0 %v1062_v24, %s3977_s25  ;;  %1066 = vrot.lane.b32.xlu1 %v1062_v24, %s3967_s9 }
 0x224   : > { %1074 = vrot.lane.b32.xlu0 %v1062_v24, %s3991_s19  ;;  %1069 = vrot.lane.b32.xlu1 %v1062_v24, %s3968_s10 }
 0x228   : > { %1082 = vrot.lane.b32.xlu0 %v1062_v24, %s3985_s23  ;;  %1189 = vrot.lane.b32.xlu1 %v1062_v24, %s3978_s26 }
 0x22c   : > { %1194 = vrot.lane.b32.xlu0 %v1062_v24, %s3949_s12  ;;  %1077 = vrot.lane.b32.xlu1 %v1062_v24, %s3992_s20 }
 0x230   : > { %1288 = vrot.lane.b32.xlu0 %v1062_v24, %s3959_s21  ;;  %1085 = vrot.lane.b32.xlu1 %v1062_v24, %s3986_s24 }
 0x234   : > { %1296 = vrot.lane.b32.xlu0 %v1062_v24, %s4809_s15  ;;  %1197 = vrot.lane.b32.xlu1 %v1062_v24, %s3948_s11 }
 0x238   : > { %1390 = vrot.lane.b32.xlu0 %v1062_v24, %s4807_s29  ;;  %1291 = vrot.lane.b32.xlu1 %v1062_v24, %s4811_s16 }
 0x23c   : > { %1094 = vperm.xlu0 %3934, %v1063_v29   ;;  %1299 = vrot.lane.b32.xlu1 %v1062_v24, %s4812_s18 }
 0x240   : > { %1393 = vrot.lane.b32.xlu1 %v1062_v24, %s4813_s13 }
 0x244   : > { %1099 = vperm.xlu1 %3935, %v1064_v30  }
 0x292   : > { %v1187_v31 = vpop.permute.xlu0 %1186  ;;  %v1067_v33 = vpop.permute.xlu1 %1066 }
 0x296   : > { %v1075_v34 = vpop.permute.xlu0 %1074  ;;  %v1070_v35 = vpop.permute.xlu1 %1069 }
 0x297   : > { %v1072_v36 = vsel %vm596_vm9, %v1067_v33, %v1070_v35 }
 0x298   : > { %v1073_v37 = vmul.f32 %v4258_v39, %v1072_v36 }
 0x29a   : > { %v3649_v38 = vpack.c.bf16 %v1073_v37, %v1062_v24  ;;  %v1083_v40 = vpop.permute.xlu0 %1082  ;;  %v1190_v41 = vpop.permute.xlu1 %1189 }
 0x29b   : > { %v1192_v42 = vsel %vm621_vm14, %v1187_v31, %v1190_v41 }
 0x29c   : > { %v1193_v43 = vmul.f32 %v4286_v32, %v1192_v42  ;;  %3650 = vmatprep.subr.bf16.mxu0 %v3649_v38 }
 0x29d   : > { %3652 = vmatpush3.bf16.msra.mxu0 %v3649_v38 }
 0x29e   : > { %v3657_v44 = vpack.c.bf16 %v1193_v43, %v1062_v24  ;;  %v1078_v45 = vpop.permute.xlu1 %1077  ;;  %v1195_v47 = vpop.permute.xlu0 %1194 }
 0x29f   : > { %v1080_v48 = vsel %vm496_vm10, %v1075_v34, %v1078_v45 }
 0x2a0   : > { %3658 = vmatprep.subr.bf16.mxu1 %v3657_v44  ;;  %v1081_v51 = vmul.f32 %v4322_v46, %v1080_v48 }
 0x2a1   : > { %3660 = vmatpush3.bf16.msra.mxu1 %v3657_v44 }
 0x2a2   : > { %v1086_v49 = vpop.permute.xlu1 %1085  ;;  %v1289_v53 = vpop.permute.xlu0 %1288 }
 0x2a3   : > { %v1088_v50 = vsel %vm471_vm4, %v1083_v40, %v1086_v49  ;;  %v3999_v49 = vmov 0.0  }
 0x2a4   : > { %v1089_v52 = vmul.f32 %v4306_v12, %v1088_v50  ;;  %v1484_v50 = vld [vmem:[%s4799_s7] sm:$0x7] }
 0x2a6   : > { %v1198_v54 = vpop.permute.xlu1 %1197  ;;  %v3653_v56 = vpack.c.bf16 %v1089_v52, %v1081_v51  ;;  %v1297_v63 = vpop.permute.xlu0 %1296 }
 0x2a7   : > { %v1200_v57 = vsel %vm521_vm0, %v1195_v47, %v1198_v54 }
 0x2a8   : > { %v1201_v58 = vmul.f32 %v4153_v6, %v1200_v57  ;;  %3654 = vmatprep.subr.bf16.mxu0 %v3653_v56  ;;  %v3005_v6 = vld [vmem:[%s4796_s4 + $0x18] sm:$0xff] }
 0x2a9   : > { %3656 = vmatpush3.bf16.msra.mxu0 %v3653_v56 }
 0x2aa   : > { %3666 = vmatprep.subr.bf16.mxu0 %v3649_v38  ;;  %v1292_v60 = vpop.permute.xlu1 %1291  ;;  %v3661_v61 = vpack.c.bf16 %v1201_v58, %v1081_v51  ;;  %v1391_v10 = vpop.permute.xlu0 %1390 }
 0x2ab   : > { %v1294_v3 = vsel %vm721_vm5, %v1289_v53, %v1292_v60 }
 0x2ac   : > { %3251 = vmatmul.mubr.msk.f32.vlgmr.msra.gmra.mrb[2].mxu0 %vm1102_vm13, %v1091_v59  ;;  %3662 = vmatprep.subr.bf16.mxu1 %v3661_v61  ;;  %v1295_v8 = vmul.f32 %v4204_v55, %v1294_v3  ;;  %v3009_v55 = vld [vmem:[%s4796_s4 + $0x28] sm:$0xff] }
 0x2ad   : > { %3664 = vmatpush3.bf16.msra.mxu1 %v3661_v61  ;;  %3668 = vmatpush3.bf16.msra.mxu0 %v3649_v38 }
 0x2ae   : > { %3674 = vmatprep.subr.bf16.mxu1 %v3657_v44  ;;  %v1300_v4 = vpop.permute.xlu1 %1299  ;;  %3272 = vmatprep.mubr.msk.f32.mxu0 %vm1102_vm13, %v3008_v62 }
 0x2af   : > { %v1302_v7 = vsel %vm696_vm2, %v1297_v63, %v1300_v4 }
 0x2b0   : > { %v1303_v9 = vmul.f32 %v4172_v25, %v1302_v7  ;;  %3262 = vmatmul.mubr.msk.f32.vlgmr.msra.gmra.mrb[2].mxu1 %vm1102_vm13, %v3005_v6  ;;  %v3013_v25 = vld [vmem:[%s4796_s4 + $0x38] sm:$0xff] }
 0x2b1   : > { %3676 = vmatpush3.bf16.msra.mxu1 %v3657_v44  ;;  %3283 = vmatprep.mubr.msk.f32.mxu1 %vm1102_vm13, %v3012_v5 }
 0x2b2   : > { %v1394_v11 = vpop.permute.xlu1 %1393  ;;  %v3669_v0 = vpack.c.bf16 %v1303_v9, %v1295_v8 }
 0x2b3   : > { %v1396_v1 = vsel %vm746_vm8, %v1391_v10, %v1394_v11 }
 0x2b4   : > { %v1397_v13 = vmul.f32 %v4244_v28, %v1396_v1  ;;  %3670 = vmatprep.subr.bf16.mxu0 %v3669_v0 }
 0x2b5   : > { %3672 = vmatpush3.bf16.msra.mxu0 %v3669_v0 }
 0x2b6   : > { %v3677_v14 = vpack.c.bf16 %v1397_v13, %v1295_v8  ;;  %3681 = vmatprep.subr.bf16.mxu0 %v3951_v2 }
 0x2b8   : > { %3273 = vmatmul.mubr.msk.f32.vlgmr.msra.gmra.mrb[4].mxu0 %vm1102_vm13, %v3009_v55  ;;  %3678 = vmatprep.subr.bf16.mxu1 %v3677_v14 }
 0x2b9   : > { %3680 = vmatpush3.bf16.msra.mxu1 %v3677_v14  ;;  %3302 = vmatprep.mubr.msk.f32.mxu0 %vm3998_vm15, %v3999_v49 }
 0x2ba   : > { %3693 = vmatprep.subr.bf16.mxu1 %v3951_v2 }
 0x2bb   : > { %v1095_v16 = vpop.permute.xlu0 %1094 }
 0x2bc   : > { %3284 = vmatmul.mubr.msk.f32.vlgmr.msra.gmra.mrb[4].mxu1 %vm1102_vm13, %v3013_v25 }
 0x2bd   : > { %3321 = vmatprep.mubr.msk.f32.mxu1 %vm3998_vm15, %v3999_v49 }
 0x2c3   : > { %v1100_v28 = vpop.permute.xlu1 %1099 }
 0x37f   : > { %v3252_v15 = vpop.f32.mrb[2].mxu0 }
 0x380   : > { %v1175_v17 = vpop.f32.mrb[3].mxu0  ;;  %v1181_v18 = vadd.f32 %v3252_v15, %v1100_v28 }
 0x381   : > { %v1176_v19 = vadd.f32 %v1175_v17, %v1095_v16 }
 0x382   : > { %v4413_v20 = vmax.f32 %v1181_v18, 0.0 }
 0x383   : > { %v4415_v21 = vmax.f32 %v1176_v19, 0.0  ;;  %v3263_v22 = vpop.f32.mrb[2].mxu1 }
 0x384   : > { %v1283_v23 = vadd.f32 %v3263_v22, %v1100_v28  ;;  %v1277_v24 = vpop.f32.mrb[3].mxu1 }
 0x385   : > { %v4419_v26 = vpack.c.bf16 %v4413_v20, %v4415_v21  ;;  %v1278_v27 = vadd.f32 %v1277_v24, %v1095_v16 }
 0x386   : > { %v4421_v29 = vmax.f32 %v1283_v23, 0.0 }
 0x387   : > { %v4423_v30 = vmax.f32 %v1278_v27, 0.0  ;;  %3683 = vmatpush3.bf16.msra.mxu0 %v4419_v26 }
 0x388   : > { %1490 = vrot.lane.b32.xlu1 %v4421_v29, %s3967_s9  ;;  %3684 = vmatprep.subr.bf16.mxu0 %v3951_v2 }
 0x389   : > { %v4431_v31 = vpack.c.bf16 %v4421_v29, %v4423_v30  ;;  %1488 = vrot.lane.b32.xlu0 %v4423_v30, %s3967_s9 }
 0x38b   : > { %v3274_v33 = vpop.f32.mrb[4].mxu0  ;;  %3695 = vmatpush3.bf16.msra.mxu1 %v4431_v31 }
 0x38c   : > { %v1385_v34 = vadd.f32 %v3274_v33, %v1100_v28  ;;  %v1379_v35 = vpop.f32.mrb[5].mxu0  ;;  %1496 = vrot.lane.b32.xlu1 %v4421_v29, %s3968_s10  ;;  %3696 = vmatprep.subr.bf16.mxu1 %v3951_v2 }
 0x38d   : > { %v1380_v36 = vadd.f32 %v1379_v35, %v1095_v16  ;;  %1494 = vrot.lane.b32.xlu0 %v4423_v30, %s3968_s10 }
 0x38e   : > { %v1389_v37 = vmax.f32 %v1385_v34, 0.0 }
 0x38f   : > { %v1388_v38 = vmax.f32 %v1380_v36, 0.0  ;;  %v3285_v40 = vpop.f32.mrb[4].mxu1  ;;  %3698 = vmatpush3.bf16.msra.mxu1 %v4419_v26 }
 0x390   : > { %v1479_v41 = vadd.f32 %v3285_v40, %v1100_v28  ;;  %v1473_v42 = vpop.f32.mrb[5].mxu1  ;;  %1508 = vrot.lane.b32.xlu1 %v1389_v37, %s3991_s19  ;;  %3699 = vmatprep.subr.bf16.mxu1 %v3951_v2 }
 0x391   : > { %v4444_v43 = vpack.c.bf16 %v1389_v37, %v1388_v38  ;;  %v1474_v44 = vadd.f32 %v1473_v42, %v1095_v16  ;;  %1506 = vrot.lane.b32.xlu0 %v1388_v38, %s3991_s19 }
 0x392   : > { %v1483_v45 = vmax.f32 %v1479_v41, 0.0 }
 0x393   : > { %v1482_v47 = vmax.f32 %v1474_v44, 0.0 }
 0x394   : > { %1514 = vrot.lane.b32.xlu1 %v1389_v37, %s3992_s20 }
 0x395   : > { %v4448_v48 = vpack.c.bf16 %v1483_v45, %v1482_v47  ;;  %1512 = vrot.lane.b32.xlu0 %v1388_v38, %s3992_s20 }
 0x398   : > { %1621 = vrot.lane.b32.xlu1 %v1483_v45, %s3991_s19 }
 0x399   : > { %1619 = vrot.lane.b32.xlu0 %v1482_v47, %s3991_s19 }
 0x39c   : > { %1627 = vrot.lane.b32.xlu1 %v1483_v45, %s3992_s20 }
 0x39d   : > { %1625 = vrot.lane.b32.xlu0 %v1482_v47, %s3992_s20 }
 0x3a0   : > { %1526 = vrot.lane.b32.xlu1 %v1483_v45, %s3985_s23 }
 0x3a1   : > { %1524 = vrot.lane.b32.xlu0 %v1482_v47, %s3985_s23 }
 0x3a4   : > { %1532 = vrot.lane.b32.xlu1 %v1483_v45, %s3986_s24 }
 0x3a5   : > { %1530 = vrot.lane.b32.xlu0 %v1482_v47, %s3986_s24 }
 0x3a8   : > { %1707 = vrot.lane.b32.xlu1 %v1483_v45, %s3967_s9 }
 0x3a9   : > { %1705 = vrot.lane.b32.xlu0 %v1482_v47, %s3967_s9 }
 0x3ac   : > { %1713 = vrot.lane.b32.xlu1 %v1483_v45, %s3968_s10 }
 0x3ad   : > { %1711 = vrot.lane.b32.xlu0 %v1482_v47, %s3968_s10 }
 0x3b0   : > { %1940 = vrot.lane.b32.xlu1 %v4413_v20, %s3977_s25 }
 0x3b1   : > { %1938 = vrot.lane.b32.xlu0 %v4415_v21, %s3977_s25 }
 0x3b4   : > { %1946 = vrot.lane.b32.xlu1 %v4413_v20, %s3978_s26 }
 0x3b5   : > { %1944 = vrot.lane.b32.xlu0 %v4415_v21, %s3978_s26 }
 0x3b8   : > { %1956 = vrot.lane.b32.xlu1 %v1389_v37, %s3949_s12 }
 0x3b9   : > { %1954 = vrot.lane.b32.xlu0 %v1388_v38, %s3949_s12  ;;  %s4815_s12 = smov 119  }
 0x3bc   : > { %1962 = vrot.lane.b32.xlu1 %v1389_v37, %s3948_s11 }
 0x3bd   : > { %1960 = vrot.lane.b32.xlu0 %v1388_v38, %s3948_s11  ;;  %s4814_s11 = smov 121  }
 0x3c0   : > { %2112 = vrot.lane.b32.xlu1 %v1389_v37, %s3977_s25 }
 0x3c1   : > { %2110 = vrot.lane.b32.xlu0 %v1388_v38, %s3977_s25 }
 0x3c4   : > { %2118 = vrot.lane.b32.xlu1 %v1389_v37, %s3978_s26 }
 0x3c5   : > { %2116 = vrot.lane.b32.xlu0 %v1388_v38, %s3978_s26 }
 0x3c8   : > { %2343 = vrot.lane.b32.xlu1 %v4413_v20, %s3959_s21 }
 0x3c9   : > { %2341 = vrot.lane.b32.xlu0 %v4415_v21, %s3959_s21 }
 0x3cc   : > { %2349 = vrot.lane.b32.xlu1 %v4413_v20, %s4811_s16 }
 0x3cd   : > { %2347 = vrot.lane.b32.xlu0 %v4415_v21, %s4811_s16 }
 0x3d0   : > { %2445 = vrot.lane.b32.xlu1 %v4421_v29, %s3959_s21 }
 0x3d1   : > { %2443 = vrot.lane.b32.xlu0 %v4423_v30, %s3959_s21 }
 0x3d4   : > { %2451 = vrot.lane.b32.xlu1 %v4421_v29, %s4811_s16 }
 0x3d5   : > { %2449 = vrot.lane.b32.xlu0 %v4423_v30, %s4811_s16 }
 0x3d8   : > { %2359 = vrot.lane.b32.xlu1 %v4421_v29, %s4814_s11 }
 0x3d9   : > { %2357 = vrot.lane.b32.xlu0 %v4423_v30, %s4814_s11  ;;  %s4000_s11 = smov 64  }
 0x3dc   : > { %2365 = vrot.lane.b32.xlu1 %v4421_v29, %s4812_s18 }
 0x3dd   : > { %2363 = vrot.lane.b32.xlu0 %v4423_v30, %s4812_s18 }
 0x3e0   : > { %2746 = vrot.lane.b32.xlu1 %v4413_v20, %s4815_s12 }
 0x3e1   : > { %2744 = vrot.lane.b32.xlu0 %v4415_v21, %s4815_s12  ;;  %s3038_s12 = sshll.u32 %s4817_s28, 5 }
 0x3e2   : > { %s305_s10 = scalar_lea.vmem %s4800_s8, %s3038_s12 }
 0x3e4   : > { %2752 = vrot.lane.b32.xlu1 %v4413_v20, %s4813_s13 }
 0x3e5   : > { %2750 = vrot.lane.b32.xlu0 %v4415_v21, %s4813_s13 }
 0x3e9   : > { %1542 = vperm.xlu0 %3934, %v1484_v50  }
 0x3fa   : > { %v1491_v51 = vpop.permute.xlu1 %1490 }
 0x3fb   : > { %v1489_v52 = vpop.permute.xlu0 %1488 }
 0x3fe   : > { %v1497_v53 = vpop.permute.xlu1 %1496 }
 0x3ff   : > { %v1501_v54 = vsel %vm596_vm9, %v1491_v51, %v1497_v53  ;;  %v1495_v56 = vpop.permute.xlu0 %1494 }
 0x400   : > { %v1503_v57 = vmul.f32 %v4258_v39, %v1501_v54  ;;  %v1500_v58 = vsel %vm596_vm9, %v1489_v52, %v1495_v56 }
 0x401   : > { %v1502_v59 = vmul.f32 %v4258_v39, %v1500_v58 }
 0x402   : > { %v1509_v60 = vpop.permute.xlu1 %1508 }
 0x403   : > { %v4522_v61 = vpack.c.bf16 %v1503_v57, %v1502_v59  ;;  %v1507_v62 = vpop.permute.xlu0 %1506  ;;  %v3936_v57 = vld [vmem:[%s4795_s3 + $0x8] ss:$0 sm:$0xff] }
 0x405   : > { %3686 = vmatpush3.bf16.msra.mxu0 %v4522_v61 }
 0x406   : > { %v1515_v63 = vpop.permute.xlu1 %1514  ;;  %3687 = vmatprep.subr.bf16.mxu0 %v3951_v2 }
 0x407   : > { %v1519_v3 = vsel %vm496_vm10, %v1509_v60, %v1515_v63  ;;  %v1513_v6 = vpop.permute.xlu0 %1512 }
 0x408   : > { %v1521_v4 = vmul.f32 %v4322_v46, %v1519_v3  ;;  %v1518_v5 = vsel %vm496_vm10, %v1507_v62, %v1513_v6 }
 0x409   : > { %v1520_v7 = vmul.f32 %v4322_v46, %v1518_v5  ;;  %v3020_v5 = vld [vmem:[%s4798_s6 + $0x4] sm:$0x7] }
 0x40a   : > { %v1622_v8 = vpop.permute.xlu1 %1621 }
 0x40b   : > { %v4530_v9 = vpack.c.bf16 %v1521_v4, %v1520_v7  ;;  %v1620_v10 = vpop.permute.xlu0 %1619 }
 0x40d   : > { %3689 = vmatpush3.bf16.msra.mxu0 %v4530_v9 }
 0x40e   : > { %v1628_v11 = vpop.permute.xlu1 %1627  ;;  %3690 = vmatprep.subr.bf16.mxu0 %v3951_v2 }
 0x40f   : > { %v1632_v0 = vsel %vm496_vm10, %v1622_v8, %v1628_v11  ;;  %v1626_v1 = vpop.permute.xlu0 %1625 }
 0x410   : > { %v1634_v13 = vmul.f32 %v4322_v46, %v1632_v0  ;;  %v1631_v55 = vsel %vm496_vm10, %v1620_v10, %v1626_v1 }
 0x411   : > { %v1633_v14 = vmul.f32 %v4322_v46, %v1631_v55  ;;  %v1485_v46 = vld [vmem:[%s4798_s6] sm:$0x7] }
 0x412   : > { %v1527_v25 = vpop.permute.xlu1 %1526 }
 0x413   : > { %v4538_v28 = vpack.c.bf16 %v1634_v13, %v1633_v14  ;;  %v1525_v15 = vpop.permute.xlu0 %1524 }
 0x415   : > { %3701 = vmatpush3.bf16.msra.mxu1 %v4538_v28 }
 0x416   : > { %v1533_v16 = vpop.permute.xlu1 %1532  ;;  %3702 = vmatprep.subr.bf16.mxu1 %v3951_v2 }
 0x417   : > { %v1537_v17 = vsel %vm471_vm4, %v1527_v25, %v1533_v16  ;;  %v1531_v18 = vpop.permute.xlu0 %1530  ;;  %v3025_v25 = vld [vmem:[%s4798_s6 + $0x8] sm:$0x7] }
 0x418   : > { %v1539_v19 = vmul.f32 %v4306_v12, %v1537_v17  ;;  %v1536_v20 = vsel %vm471_vm4, %v1525_v15, %v1531_v18  ;;  %v3937_v17 = vld [vmem:[%s4795_s3 + $0x11] ss:$0 sm:$0xff] }
 0x419   : > { %v1538_v21 = vmul.f32 %v4306_v12, %v1536_v20  ;;  %3704 = vmatpush3.bf16.msra.mxu1 %v4530_v9 }
 0x41a   : > { %v1708_v22 = vpop.permute.xlu1 %1707  ;;  %3717 = vmatprep.subr.bf16.mxu1 %v3951_v2 }
 0x41b   : > { %v3691_v23 = vpack.c.bf16 %v1539_v19, %v1538_v21  ;;  %v1706_v24 = vpop.permute.xlu0 %1705 }
 0x41c   : > { %3322 = vmatmul.mubr.msk.f32.vlgmr.msra.gmra.mrb[6].mxu1 %vm1545_vm1, %v1485_v46 }
 0x41d   : > { %3692 = vmatpush3.bf16.msra.mxu0 %v3691_v23  ;;  %3719 = vmatpush3.bf16.msra.mxu1 %v4448_v48 }
 0x41e   : > { %v1714_v27 = vpop.permute.xlu1 %1713  ;;  %3705 = vmatprep.subr.bf16.mxu0 %v3951_v2  ;;  %3720 = vmatprep.subr.bf16.mxu1 %v3951_v2 }
 0x41f   : > { %v1718_v12 = vsel %vm596_vm9, %v1708_v22, %v1714_v27  ;;  %v1712_v29 = vpop.permute.xlu0 %1711  ;;  %3359 = vmatprep.mubr.msk.f32.mxu1 %vm3998_vm15, %v3999_v49 }
 0x420   : > { %v1720_v30 = vmul.f32 %v4258_v39, %v1718_v12  ;;  %v1717_v33 = vsel %vm596_vm9, %v1706_v24, %v1712_v29  ;;  %3303 = vmatmul.mubr.msk.f32.vlgmr.msra.gmra.mrb[6].mxu0 %vm1545_vm1, %v1485_v46 }
 0x421   : > { %v1719_v34 = vmul.f32 %v4258_v39, %v1717_v33  ;;  %3707 = vmatpush3.bf16.msra.mxu0 %v4444_v43  ;;  %3722 = vmatpush3.bf16.msra.mxu1 %v4444_v43  ;;  %v3938_v33 = vld [vmem:[%s4795_s3 + $0x10] ss:$0 sm:$0xff] }
 0x422   : > { %v1941_v35 = vpop.permute.xlu1 %1940  ;;  %3708 = vmatprep.subr.bf16.mxu0 %v3951_v2  ;;  %3723 = vmatprep.subr.bf16.mxu1 %v3951_v2 }
 0x423   : > { %v4566_v36 = vpack.c.bf16 %v1720_v30, %v1719_v34  ;;  %v1939_v37 = vpop.permute.xlu0 %1938  ;;  %3340 = vmatprep.mubr.msk.f32.mxu0 %vm3998_vm15, %v3999_v49 }
 0x425   : > { %3710 = vmatpush3.bf16.msra.mxu0 %v4566_v36  ;;  %3725 = vmatpush3.bf16.msra.mxu1 %v4431_v31 }
 0x426   : > { %v1947_v39 = vpop.permute.xlu1 %1946  ;;  %3711 = vmatprep.subr.bf16.mxu0 %v3951_v2  ;;  %3726 = vmatprep.subr.bf16.mxu1 %v3951_v2 }
 0x427   : > { %v1945_v38 = vpop.permute.xlu0 %1944  ;;  %v1951_v40 = vsel %vm621_vm14, %v1941_v35, %v1947_v39 }
 0x428   : > { %v1950_v41 = vsel %vm621_vm14, %v1939_v37, %v1945_v38  ;;  %v1953_v44 = vmul.f32 %v4286_v32, %v1951_v40 }
 0x429   : > { %3713 = vmatpush3.bf16.msra.mxu0 %v4419_v26  ;;  %3728 = vmatpush3.bf16.msra.mxu1 %v4419_v26  ;;  %v1952_v45 = vmul.f32 %v4286_v32, %v1950_v41 }
 0x42a   : > { %v1957_v42 = vpop.permute.xlu1 %1956  ;;  %3714 = vmatprep.subr.bf16.mxu0 %v3951_v2  ;;  %3741 = vmatprep.subr.bf16.mxu1 %v3951_v2 }
 0x42b   : > { %v1955_v47 = vpop.permute.xlu0 %1954  ;;  %v4587_v51 = vpack.c.bf16 %v1953_v44, %v1952_v45 }
 0x42c   : > { %3360 = vmatmul.mubr.msk.f32.vlgmr.msra.gmra.mrb[8].mxu1 %vm1545_vm1, %v1485_v46 }
 0x42d   : > { %3716 = vmatpush3.bf16.msra.mxu0 %v4522_v61  ;;  %3743 = vmatpush3.bf16.msra.mxu1 %v4431_v31 }
 0x42e   : > { %v1963_v50 = vpop.permute.xlu1 %1962  ;;  %3729 = vmatprep.subr.bf16.mxu0 %v3951_v2  ;;  %3744 = vmatprep.subr.bf16.mxu1 %v3951_v2 }
 0x42f   : > { %v1961_v52 = vpop.permute.xlu0 %1960  ;;  %3397 = vmatprep.mubr.msk.f32.mxu1 %vm3998_vm15, %v3999_v49  ;;  %v1967_v53 = vsel %vm521_vm0, %v1957_v42, %v1963_v50  ;;  %v3939_v42 = vld [vmem:[%s4795_s3 + $0x12] ss:$0 sm:$0xff] }
 0x430   : > { %v1966_v54 = vsel %vm521_vm0, %v1955_v47, %v1961_v52  ;;  %3341 = vmatmul.mubr.msk.f32.vlgmr.msra.gmra.mrb[8].mxu0 %vm1545_vm1, %v1485_v46  ;;  %v1969_v58 = vmul.f32 %v3936_v57, %v1967_v53 }
 0x431   : > { %3731 = vmatpush3.bf16.msra.mxu0 %v4419_v26  ;;  %3746 = vmatpush3.bf16.msra.mxu1 %v4587_v51  ;;  %v1968_v59 = vmul.f32 %v3936_v57, %v1966_v54 }
 0x432   : > { %v2113_v56 = vpop.permute.xlu1 %2112  ;;  %3732 = vmatprep.subr.bf16.mxu0 %v3951_v2  ;;  %3747 = vmatprep.subr.bf16.mxu1 %v3951_v2 }
 0x433   : > { %v2111_v60 = vpop.permute.xlu0 %2110  ;;  %3378 = vmatprep.mubr.msk.f32.mxu0 %vm3998_vm15, %v3999_v49  ;;  %v3751_v63 = vpack.c.bf16 %v1969_v58, %v1968_v59 }
 0x435   : > { %3734 = vmatpush3.bf16.msra.mxu0 %v4431_v31  ;;  %3749 = vmatpush3.bf16.msra.mxu1 %v4538_v28 }
 0x436   : > { %v2119_v62 = vpop.permute.xlu1 %2118  ;;  %3735 = vmatprep.subr.bf16.mxu0 %v3951_v2  ;;  %3750 = vmatprep.subr.bf16.mxu1 %v3951_v2 }
 0x437   : > { %v2117_v3 = vpop.permute.xlu0 %2116  ;;  %v2123_v6 = vsel %vm621_vm14, %v2113_v56, %v2119_v62 }
 0x438   : > { %v2122_v4 = vsel %vm621_vm14, %v2111_v60, %v2117_v3  ;;  %v2125_v7 = vmul.f32 %v4286_v32, %v2123_v6 }
 0x439   : > { %3737 = vmatpush3.bf16.msra.mxu0 %v4530_v9  ;;  %3752 = vmatpush3.bf16.msra.mxu1 %v3751_v63  ;;  %v2124_v8 = vmul.f32 %v4286_v32, %v2122_v4 }
 0x43a   : > { %3738 = vmatprep.subr.bf16.mxu0 %v3951_v2  ;;  %3765 = vmatprep.subr.bf16.mxu1 %v3951_v2  ;;  %v2344_v32 = vpop.permute.xlu1 %2343 }
 0x43b   : > { %v4622_v9 = vpack.c.bf16 %v2125_v7, %v2124_v8  ;;  %v2342_v10 = vpop.permute.xlu0 %2341 }
 0x43c   : > { %3398 = vmatmul.mubr.msk.f32.vlgmr.msra.gmra.mrb[10].mxu1 %vm1545_vm1, %v3020_v5 }
 0x43d   : > { %3740 = vmatpush3.bf16.msra.mxu0 %v4538_v28  ;;  %3767 = vmatpush3.bf16.msra.mxu1 %v4448_v48 }
 0x43e   : > { %3753 = vmatprep.subr.bf16.mxu0 %v3951_v2  ;;  %3768 = vmatprep.subr.bf16.mxu1 %v3951_v2  ;;  %v2350_v11 = vpop.permute.xlu1 %2349 }
 0x43f   : > { %3435 = vmatprep.mubr.msk.f32.mxu1 %vm3998_vm15, %v3999_v49  ;;  %v2348_v0 = vpop.permute.xlu0 %2347  ;;  %v2354_v20 = vsel %vm721_vm5, %v2344_v32, %v2350_v11 }
 0x440   : > { %3379 = vmatmul.mubr.msk.f32.vlgmr.msra.gmra.mrb[10].mxu0 %vm1545_vm1, %v3020_v5  ;;  %v2353_v21 = vsel %vm721_vm5, %v2342_v10, %v2348_v0  ;;  %v2356_v23 = vmul.f32 %v3937_v17, %v2354_v20 }
 0x441   : > { %3755 = vmatpush3.bf16.msra.mxu0 %v4444_v43  ;;  %3770 = vmatpush3.bf16.msra.mxu1 %v4622_v9  ;;  %v2355_v24 = vmul.f32 %v3937_v17, %v2353_v21 }
 0x442   : > { %3756 = vmatprep.subr.bf16.mxu0 %v3951_v2  ;;  %3771 = vmatprep.subr.bf16.mxu1 %v3951_v2  ;;  %v2446_v1 = vpop.permute.xlu1 %2445 }
 0x443   : > { %3416 = vmatprep.mubr.msk.f32.mxu0 %vm3998_vm15, %v3999_v49  ;;  %v2444_v13 = vpop.permute.xlu0 %2443  ;;  %v3808_v30 = vpack.c.bf16 %v2356_v23, %v2355_v24 }
 0x445   : > { %3758 = vmatpush3.bf16.msra.mxu0 %v4448_v48  ;;  %3773 = vmatpush3.bf16.msra.mxu1 %v4431_v31 }
 0x446   : > { %3759 = vmatprep.subr.bf16.mxu0 %v3951_v2  ;;  %3774 = vmatprep.subr.bf16.mxu1 %v3951_v2  ;;  %v2452_v55 = vpop.permute.xlu1 %2451 }
 0x447   : > { %v2450_v14 = vpop.permute.xlu0 %2449  ;;  %v2456_v15 = vsel %vm721_vm5, %v2446_v1, %v2452_v55 }
 0x448   : > { %v2455_v16 = vsel %vm721_vm5, %v2444_v13, %v2450_v14  ;;  %v2458_v18 = vmul.f32 %v3937_v17, %v2456_v15 }
 0x449   : > { %3761 = vmatpush3.bf16.msra.mxu0 %v4419_v26  ;;  %3776 = vmatpush3.bf16.msra.mxu1 %v4587_v51  ;;  %v2457_v19 = vmul.f32 %v3937_v17, %v2455_v16 }
 0x44a   : > { %3762 = vmatprep.subr.bf16.mxu0 %v3951_v2  ;;  %3789 = vmatprep.subr.bf16.mxu1 %v3951_v2  ;;  %v2360_v28 = vpop.permute.xlu1 %2359 }
 0x44b   : > { %v4685_v27 = vpack.c.bf16 %v2458_v18, %v2457_v19 }
 0x44c   : > { %3436 = vmatmul.mubr.msk.f32.vlgmr.msra.gmra.mrb[12].mxu1 %vm1545_vm1, %v3020_v5 }
 0x44d   : > { %3764 = vmatpush3.bf16.msra.mxu0 %v4431_v31  ;;  %3791 = vmatpush3.bf16.msra.mxu1 %v4431_v31 }
 0x44e   : > { %3777 = vmatprep.subr.bf16.mxu0 %v3951_v2  ;;  %3792 = vmatprep.subr.bf16.mxu1 %v3951_v2  ;;  %v2366_v46 = vpop.permute.xlu1 %2365 }
 0x44f   : > { %3473 = vmatprep.mubr.msk.f32.mxu1 %vm3998_vm15, %v3999_v49  ;;  %v2370_v12 = vsel %vm696_vm2, %v2360_v28, %v2366_v46 }
 0x450   : > { %3417 = vmatmul.mubr.msk.f32.vlgmr.msra.gmra.mrb[12].mxu0 %vm1545_vm1, %v3020_v5  ;;  %v2372_v34 = vmul.f32 %v3938_v33, %v2370_v12 }
 0x451   : > { %3779 = vmatpush3.bf16.msra.mxu0 %v4419_v26  ;;  %3794 = vmatpush3.bf16.msra.mxu1 %v4419_v26 }
 0x452   : > { %3780 = vmatprep.subr.bf16.mxu0 %v3951_v2  ;;  %3795 = vmatprep.subr.bf16.mxu1 %v3951_v2  ;;  %v2747_v37 = vpop.permute.xlu1 %2746 }
 0x453   : > { %3454 = vmatprep.mubr.msk.f32.mxu0 %vm3998_vm15, %v3999_v49 }
 0x455   : > { %3782 = vmatpush3.bf16.msra.mxu0 %v4522_v61  ;;  %3797 = vmatpush3.bf16.msra.mxu1 %v4448_v48  ;;  %v2358_v61 = vpop.permute.xlu0 %2357 }
 0x456   : > { %3783 = vmatprep.subr.bf16.mxu0 %v3951_v2  ;;  %3798 = vmatprep.subr.bf16.mxu1 %v3951_v2 }
 0x459   : > { %3785 = vmatpush3.bf16.msra.mxu0 %v4444_v43  ;;  %3800 = vmatpush3.bf16.msra.mxu1 %v4444_v43  ;;  %v2364_v22 = vpop.permute.xlu0 %2363 }
 0x45a   : > { %3786 = vmatprep.subr.bf16.mxu0 %v3951_v2  ;;  %3813 = vmatprep.subr.bf16.mxu1 %v3951_v2  ;;  %v2369_v29 = vsel %vm696_vm2, %v2358_v61, %v2364_v22 }
 0x45b   : > { %v2371_v35 = vmul.f32 %v3938_v33, %v2369_v29 }
 0x45c   : > { %3474 = vmatmul.mubr.msk.f32.vlgmr.msra.gmra.mrb[14].mxu1 %vm1545_vm1, %v3025_v25 }
 0x45d   : > { %3788 = vmatpush3.bf16.msra.mxu0 %v4566_v36  ;;  %3815 = vmatpush3.bf16.msra.mxu1 %v4448_v48  ;;  %v2745_v39 = vpop.permute.xlu0 %2744 }
 0x45e   : > { %3801 = vmatprep.subr.bf16.mxu0 %v3951_v2  ;;  %3816 = vmatprep.subr.bf16.mxu1 %v3951_v2 }
 0x45f   : > { %3511 = vmatprep.mubr.msk.f32.mxu1 %vm3998_vm15, %v3999_v49 }
 0x460   : > { %3455 = vmatmul.mubr.msk.f32.vlgmr.msra.gmra.mrb[14].mxu0 %vm1545_vm1, %v3025_v25 }
 0x461   : > { %3803 = vmatpush3.bf16.msra.mxu0 %v4444_v43  ;;  %3818 = vmatpush3.bf16.msra.mxu1 %v4444_v43  ;;  %v2751_v38 = vpop.permute.xlu0 %2750 }
 0x462   : > { %3804 = vmatprep.subr.bf16.mxu0 %v3951_v2  ;;  %3819 = vmatprep.subr.bf16.mxu1 %v3951_v2  ;;  %v2756_v41 = vsel %vm746_vm8, %v2745_v39, %v2751_v38 }
 0x463   : > { %3492 = vmatprep.mubr.msk.f32.mxu0 %vm3998_vm15, %v3999_v49  ;;  %v2758_v45 = vmul.f32 %v3939_v42, %v2756_v41 }
 0x465   : > { %3806 = vmatpush3.bf16.msra.mxu0 %v4566_v36  ;;  %3821 = vmatpush3.bf16.msra.mxu1 %v4685_v27  ;;  %v3811_v36 = vpack.c.bf16 %v2372_v34, %v2371_v35 }
 0x466   : > { %3807 = vmatprep.subr.bf16.mxu0 %v3951_v2  ;;  %3822 = vmatprep.subr.bf16.mxu1 %v3951_v2 }
 0x468   : > { %v4751_v56 = vpop.permute.xlu0 %1542 }
 0x469   : > { %3809 = vmatpush3.bf16.msra.mxu0 %v3808_v30  ;;  %3824 = vmatpush3.bf16.msra.mxu1 %v3808_v30 }
 0x46a   : > { %3810 = vmatprep.subr.bf16.mxu0 %v3951_v2  ;;  %3837 = vmatprep.subr.bf16.mxu1 %v3951_v2 }
 0x46c   : > { %3512 = vmatmul.mubr.msk.f32.vlgmr.msra.gmra.mrb[16].mxu1 %vm1545_vm1, %v3025_v25 }
 0x46d   : > { %3812 = vmatpush3.bf16.msra.mxu0 %v3811_v36  ;;  %3839 = vmatpush3.bf16.msra.mxu1 %v4431_v31 }
 0x46e   : > { %3825 = vmatprep.subr.bf16.mxu0 %v3951_v2  ;;  %3840 = vmatprep.subr.bf16.mxu1 %v3951_v2 }
 0x46f   : > { %3549 = vmatprep.mubr.msk.f32.mxu1 %vm3998_vm15, %v3999_v49 }
 0x470   : > { %3493 = vmatmul.mubr.msk.f32.vlgmr.msra.gmra.mrb[16].mxu0 %vm1545_vm1, %v3025_v25 }
 0x471   : > { %3827 = vmatpush3.bf16.msra.mxu0 %v4419_v26  ;;  %3842 = vmatpush3.bf16.msra.mxu1 %v4587_v51  ;;  %v3030_v26 = vld [vmem:[%s4798_s6 + $0xc] sm:$0x7] }
 0x472   : > { %3828 = vmatprep.subr.bf16.mxu0 %v3951_v2  ;;  %3843 = vmatprep.subr.bf16.mxu1 %v3951_v2 }
 0x473   : > { %3530 = vmatprep.mubr.msk.f32.mxu0 %vm3998_vm15, %v3999_v49 }
 0x475   : > { %3830 = vmatpush3.bf16.msra.mxu0 %v4431_v31  ;;  %3845 = vmatpush3.bf16.msra.mxu1 %v4448_v48  ;;  %v2753_v31 = vpop.permute.xlu1 %2752 }
 0x476   : > { %3831 = vmatprep.subr.bf16.mxu0 %v3951_v2  ;;  %3846 = vmatprep.subr.bf16.mxu1 %v3951_v2  ;;  %v2757_v40 = vsel %vm746_vm8, %v2747_v37, %v2753_v31 }
 0x477   : > { %v2759_v44 = vmul.f32 %v3939_v42, %v2757_v40 }
 0x479   : > { %3833 = vmatpush3.bf16.msra.mxu0 %v4444_v43  ;;  %3848 = vmatpush3.bf16.msra.mxu1 %v4622_v9 }
 0x47a   : > { %3834 = vmatprep.subr.bf16.mxu0 %v3951_v2  ;;  %3861 = vmatprep.subr.bf16.mxu1 %v3951_v2 }
 0x47c   : > { %3550 = vmatmul.mubr.msk.f32.vlgmr.msra.gmra.mrb[18].mxu1 %vm1545_vm1, %v3030_v26 }
 0x47d   : > { %3836 = vmatpush3.bf16.msra.mxu0 %v4448_v48  ;;  %3863 = vmatpush3.bf16.msra.mxu1 %v4448_v48 }
 0x47e   : > { %3849 = vmatprep.subr.bf16.mxu0 %v3951_v2  ;;  %3864 = vmatprep.subr.bf16.mxu1 %v3951_v2 }
 0x47f   : > { %3587 = vmatprep.mubr.msk.f32.mxu1 %vm3998_vm15, %v3999_v49 }
 0x480   : > { %3531 = vmatmul.mubr.msk.f32.vlgmr.msra.gmra.mrb[18].mxu0 %vm1545_vm1, %v3030_v26 }
 0x481   : > { %3851 = vmatpush3.bf16.msra.mxu0 %v4444_v43  ;;  %3866 = vmatpush3.bf16.msra.mxu1 %v4622_v9  ;;  %v3871_v43 = vpack.c.bf16 %v2759_v44, %v2758_v45 }
 0x482   : > { %3852 = vmatprep.subr.bf16.mxu0 %v3951_v2  ;;  %3867 = vmatprep.subr.bf16.mxu1 %v3951_v2 }
 0x483   : > { %3568 = vmatprep.mubr.msk.f32.mxu0 %vm3998_vm15, %v3999_v49 }
 0x485   : > { %3854 = vmatpush3.bf16.msra.mxu0 %v4448_v48  ;;  %3869 = vmatpush3.bf16.msra.mxu1 %v4685_v27 }
 0x486   : > { %3855 = vmatprep.subr.bf16.mxu0 %v3951_v2  ;;  %3870 = vmatprep.subr.bf16.mxu1 %v3951_v2 }
 0x489   : > { %3857 = vmatpush3.bf16.msra.mxu0 %v3808_v30  ;;  %3872 = vmatpush3.bf16.msra.mxu1 %v3871_v43 }
 0x48a   : > { %3858 = vmatprep.subr.bf16.mxu0 %v3951_v2 }
 0x48c   : > { %3588 = vmatmul.mubr.msk.f32.vlgmr.msra.gmra.mrb[20].mxu1 %vm1545_vm1, %v3030_v26 }
 0x48d   : > { %3860 = vmatpush3.bf16.msra.mxu0 %v4685_v27 }
 0x490   : > { %3569 = vmatmul.mubr.msk.f32.vlgmr.msra.gmra.mrb[20].mxu0 %vm1545_vm1, %v3030_v26 }
 0x4ef   : > { %v1701_v49 = vpop.f32.mrb[6].mxu1 }
 0x4f0   : > { %v3323_v47 = vpop.f32.mrb[7].mxu1  ;;  %v1702_v22 = vadd.f32 %v1701_v49, %v4751_v56 }
 0x4f3   : > { %v1615_v48 = vpop.f32.mrb[6].mxu0 }
 0x4f4   : > { %v3304_v50 = vpop.f32.mrb[7].mxu0  ;;  %v1616_v23 = vadd.f32 %v1615_v48, %v4751_v56 }
 0x4ff   : > { %v1857_v51 = vpop.f32.mrb[8].mxu1 }
 0x500   : > { %v3361_v52 = vpop.f32.mrb[9].mxu1  ;;  %v1858_v33 = vadd.f32 %v1857_v51, %v4751_v56 }
 0x503   : > { %v1787_v53 = vpop.f32.mrb[8].mxu0 }
 0x504   : > { %v3342_v54 = vpop.f32.mrb[9].mxu0  ;;  %v1788_v34 = vadd.f32 %v1787_v53, %v4751_v56 }
 0x50f   : > { %v2036_v57 = vpop.f32.mrb[10].mxu1 }
 0x510   : > { %v2037_v58 = vadd.f32 %v2036_v57, %v4751_v56  ;;  %v3399_v2 = vpop.f32.mrb[11].mxu1 }
 0x512   : > { %2835 = vrot.lane.b32.xlu0 %v2037_v58, %s4000_s11 }
 0x513   : > { %v1932_v59 = vpop.f32.mrb[10].mxu0 }
 0x514   : > { %v1933_v60 = vadd.f32 %v1932_v59, %v4751_v56  ;;  %v3380_v62 = vpop.f32.mrb[11].mxu0 }
 0x516   : > { %2831 = vrot.lane.b32.xlu1 %v1933_v60, %s4000_s11 }
 0x51f   : > { %v2192_v63 = vpop.f32.mrb[12].mxu1 }
 0x520   : > { %v2193_v3 = vadd.f32 %v2192_v63, %v4751_v56  ;;  %v3437_v6 = vpop.f32.mrb[13].mxu1 }
 0x522   : > { %2851 = vrot.lane.b32.xlu0 %v2193_v3, %s4000_s11 }
 0x523   : > { %v2106_v4 = vpop.f32.mrb[12].mxu0 }
 0x524   : > { %v2107_v5 = vadd.f32 %v2106_v4, %v4751_v56  ;;  %v3418_v7 = vpop.f32.mrb[13].mxu0 }
 0x526   : > { %2847 = vrot.lane.b32.xlu1 %v2107_v5, %s4000_s11 }
 0x52f   : > { %v2337_v8 = vpop.f32.mrb[14].mxu1 }
 0x530   : > { %v3475_v9 = vpop.f32.mrb[15].mxu1  ;;  %v2338_v31 = vadd.f32 %v2337_v8, %v4751_v56 }
 0x533   : > { %v2267_v32 = vpop.f32.mrb[14].mxu0 }
 0x534   : > { %v3456_v10 = vpop.f32.mrb[15].mxu0  ;;  %v2268_v38 = vadd.f32 %v2267_v32, %v4751_v56 }
 0x53f   : > { %v2525_v11 = vpop.f32.mrb[16].mxu1 }
 0x540   : > { %v3513_v0 = vpop.f32.mrb[17].mxu1  ;;  %v2526_v43 = vadd.f32 %v2525_v11, %v4751_v56 }
 0x543   : > { %v2439_v1 = vpop.f32.mrb[16].mxu0 }
 0x544   : > { %v3494_v13 = vpop.f32.mrb[17].mxu0  ;;  %v2440_v49 = vadd.f32 %v2439_v1, %v4751_v56 }
 0x54f   : > { %v2670_v55 = vpop.f32.mrb[18].mxu1 }
 0x550   : > { %v2671_v14 = vadd.f32 %v2670_v55, %v4751_v56  ;;  %v3551_v25 = vpop.f32.mrb[19].mxu1 }
 0x552   : > { %2843 = vrot.lane.b32.xlu0 %v2671_v14, %s4000_s11 }
 0x553   : > { %v2600_v28 = vpop.f32.mrb[18].mxu0 }
 0x554   : > { %v2601_v61 = vadd.f32 %v2600_v28, %v4751_v56  ;;  %v3532_v15 = vpop.f32.mrb[19].mxu0 }
 0x556   : > { %2839 = vrot.lane.b32.xlu1 %v2601_v61, %s4000_s11 }
 0x55f   : > { %v2826_v16 = vpop.f32.mrb[20].mxu1 }
 0x560   : > { %v2827_v17 = vadd.f32 %v2826_v16, %v4751_v56  ;;  %v3589_v18 = vpop.f32.mrb[21].mxu1 }
 0x562   : > { %2859 = vrot.lane.b32.xlu0 %v2827_v17, %s4000_s11 }
 0x563   : > { %v2740_v19 = vpop.f32.mrb[20].mxu0 }
 0x564   : > { %v2741_v20 = vadd.f32 %v2740_v19, %v4751_v56  ;;  %v3570_v21 = vpop.f32.mrb[21].mxu0 }
 0x566   : > { %2855 = vrot.lane.b32.xlu1 %v2741_v20, %s4000_s11 }
 0x584   : > { %v2836_v46 = vpop.permute.xlu0 %2835 }
 0x585   : > { %v2863_v27 = vsel %vm1545_vm1, %v1702_v22, %v2836_v46 }
 0x588   : > { %v2832_v24 = vpop.permute.xlu1 %2831 }
 0x589   : > { %v2862_v12 = vsel %vm1545_vm1, %v1616_v23, %v2832_v24 }
 0x58a   : > { %v2878_v29 = vcombine.low %v2862_v12, %v2863_v27 }
 0x58c   : > { %2886 = vst [vmem:[%s305_s10] sm:$0x77] %v2878_v29 }
 0x594   : > { %v2852_v30 = vpop.permute.xlu0 %2851 }
 0x595   : > { %v2867_v36 = vsel %vm1545_vm1, %v1858_v33, %v2852_v30 }
 0x598   : > { %v2848_v35 = vpop.permute.xlu1 %2847 }
 0x599   : > { %v2866_v37 = vsel %vm1545_vm1, %v1788_v34, %v2848_v35 }
 0x59a   : > { %v2880_v39 = vcombine.low %v2866_v37, %v2867_v36 }
 0x59c   : > { %2888 = vst [vmem:[%s305_s10 + $0x10] sm:$0x77] %v2880_v39 }
 0x5c4   : > { %v2844_v26 = vpop.permute.xlu0 %2843 }
 0x5c5   : > { %v2865_v41 = vsel %vm1545_vm1, %v2338_v31, %v2844_v26 }
 0x5c8   : > { %v2840_v40 = vpop.permute.xlu1 %2839 }
 0x5c9   : > { %v2864_v42 = vsel %vm1545_vm1, %v2268_v38, %v2840_v40 }
 0x5ca   : > { %v2879_v44 = vcombine.low %v2864_v42, %v2865_v41 }
 0x5cc   : > { %2887 = vst [vmem:[%s305_s10 + $0x8] sm:$0x77] %v2879_v44 }
 0x5d4   : > { %v2860_v45 = vpop.permute.xlu0 %2859 }
 0x5d5   : > { %v2869_v48 = vsel %vm1545_vm1, %v2526_v43, %v2860_v45 }
 0x5d8   : > { %v2856_v47 = vpop.permute.xlu1 %2855 }
 0x5d9   : > { %v2868_v50 = vsel %vm1545_vm1, %v2440_v49, %v2856_v47 }
 0x5da   : > { %v2881_v51 = vcombine.low %v2868_v50, %v2869_v48 }
 0x5dc   : > { %2889 = vst [vmem:[%s305_s10 + $0x18] sm:$0x77] %v2881_v51 }
 0x5dd PF: > { %s18_s27 = sadd.s32 1, %s3946_s27  }
 0x5de   : > { %p15_p4 = scmp.ge.s32.totalorder %s18_s27, 4  }
 0x5e0   :  { %17 = sbr.rel (!%p15_p4) target bundleno = 1 (0x1), region = 111 }

</bundles_post_ra>
